<compile_context>
chip_gen: v7x
topology: tpu7x:2x2x1
jax: 0.10.0
libtpu: 0.0.40
codegen_flags: <defaults>
</compile_context>

<pallas_src>
import functools

import jax
import jax.numpy as jnp
from jax.experimental import pallas as pl
from jax.experimental.pallas import tpu as pltpu

# module-level constants from the source script
D_MODEL = 128
N_HEADS = 16
HEAD_DIM = D_MODEL // N_HEADS
DIM_FF = 256
LN_EPS = 1e-5
SCALE = float(HEAD_DIM) ** -0.5


def _layer_norm(x, gamma, beta):
    # fused single-pass mean / variance: var = E[x^2] - E[x]^2 (fine in f32 at these scales)
    mu = jnp.mean(x, axis=-1, keepdims=True)
    ms = jnp.mean(x * x, axis=-1, keepdims=True)
    var = ms - mu * mu
    return (x - mu) * jax.lax.rsqrt(var + LN_EPS) * gamma + beta


def encoder_layer_kernel(
    x_ref, mask_ref,
    wqkv_ref, bqkv_ref, wo_ref, bo_ref,
    g1_ref, be1_ref,
    w1_ref, b1_ref, w2_ref, b2_ref,
    g2_ref, be2_ref,
    o_ref,
    *, block_b, seq_len,
):
    rows = block_b * seq_len
    hl = N_HEADS * seq_len                        # lane width of the per-head energy slab
    x = x_ref[...].reshape(rows, D_MODEL)         # (block_b*L, D)

    # ---- fused QKV projection; 1/sqrt(head_dim) is pre-folded into the Q columns ----
    qkv = jnp.dot(x, wqkv_ref[...], preferred_element_type=jnp.float32) + bqkv_ref[...]
    q = qkv[:, :D_MODEL]
    k = qkv[:, D_MODEL:2 * D_MODEL]
    v = qkv[:, 2 * D_MODEL:]

    # block-diagonal head mask (0/1 f32), built once on the host, resident across the grid
    mask = mask_ref[...]                          # (H*L, D)

    q3 = q.reshape(block_b, seq_len, D_MODEL)

    def rep(t):
        # tile the (L, D) rows N_HEADS times along sublanes (no concatenate)
        return jnp.broadcast_to(
            t.reshape(block_b, 1, seq_len, D_MODEL),
            (block_b, N_HEADS, seq_len, D_MODEL)).reshape(block_b, hl, D_MODEL)

    k_stack = rep(k) * mask                       # row h*L+j holds K[j] restricted to head h
    v_stack = rep(v) * mask

    # all head energies, all batch elements: ONE batched full-width 128-contraction matmul
    #   energy[b, q, h*L+j] = (Q_h[b,q] . K_h[b,j]) / sqrt(head_dim)
    energy = jnp.einsum("bqd,bkd->bqk", q3, k_stack,
                        preferred_element_type=jnp.float32)   # (block_b, L, H*L)

    # softmax over the HEAD axis (torch dim=1). Heads are strided by L lanes, so reduce
    # with a log2 cyclic lane-roll tree (XLU-only). Done on a 2-D slab: axis must be >= 0.
    e2 = energy.reshape(rows, hl)
    shifts = []
    step = N_HEADS
    while step > 1:
        step //= 2
        shifts.append(step * seq_len)             # [64, 32, 16, 8] for H=16, L=8
    m = e2
    for s in shifts:
        m = jnp.maximum(m, pltpu.roll(m, shift=s, axis=1))
    p = jnp.exp(e2 - m)
    den = p
    for s in shifts:
        den = den + pltpu.roll(den, shift=s, axis=1)
    w = (p / den).reshape(block_b, seq_len, hl)   # exact divide (keep 1e-4 tolerance)

    # all heads' weighted values + head concat: ONE batched full-width matmul
    attn = jnp.einsum("bqk,bkd->bqd", w, v_stack,
                      preferred_element_type=jnp.float32).reshape(rows, D_MODEL)

    attn_out = jnp.dot(attn, wo_ref[...], preferred_element_type=jnp.float32) + bo_ref[...]

    # ---- residual + norm1 + FFN + norm2 (dropouts are identity) ----
    res = attn_out                                # NOTE: no +x, matches the PyTorch source
    n1 = _layer_norm(res, g1_ref[...], be1_ref[...])
    ffn = jnp.dot(n1, w1_ref[...], preferred_element_type=jnp.float32) + b1_ref[...]
    ffn = jnp.maximum(ffn, 0.0)                   # F.relu_
    ffn = jnp.dot(ffn, w2_ref[...], preferred_element_type=jnp.float32) + b2_ref[...]
    out = _layer_norm(res + ffn, g2_ref[...], be2_ref[...])

    o_ref[...] = out.reshape(block_b, seq_len, D_MODEL)


def prepare_params(params, seq_len):
    """Host-side, once per model: fuse QKV weights, fold the attention scale into Q,
    and build the block-diagonal head mask (keeps this work out of the hot call path)."""
    (wq, bq, wk, bk, wv, bv, wo, bo, g1, be1, w1, b1, w2, b2, g2, be2) = params
    wqkv = jnp.concatenate([wq * SCALE, wk, wv], axis=1)   # (128, 384)
    bqkv = jnp.concatenate([bq * SCALE, bk, bv], axis=1)   # (1, 384)
    hl = N_HEADS * seq_len
    head_mask = (
        (jnp.arange(hl)[:, None] // seq_len) == (jnp.arange(D_MODEL)[None, :] // HEAD_DIM)
    ).astype(jnp.float32)                                  # (H*L, D), 0/1
    return (head_mask, wqkv, bqkv, wo, bo, g1, be1, w1, b1, w2, b2, g2, be2)


def _num_tensorcores():
    """Best-effort TensorCore count of the local device (v5e/v6e: 1, v7x: 2)."""
    try:
        dev = jax.devices()[0]
        if dev.platform != "tpu":
            return 1
        kind = str(getattr(dev, "device_kind", "")).lower()
        if "v7" in kind:
            return 2
        return max(1, int(getattr(dev, "num_cores", 1)))
    except Exception:
        return 1


def _pick_block_b(batch, seq_len, n_cores, max_rows=512):
    """Batch elements per grid step. On 1-TC chips the grid is a serial loop, so take the
    largest block (fills MXU sublanes, fewest per-step overheads). On 2-TC chips prefer
    >=2 grid steps so both cores get work, unless that starves the MXU."""
    divisors = [d for d in range(1, batch + 1)
                if batch % d == 0 and d * seq_len <= max_rows]
    if not divisors:
        return 1
    best_any = max(divisors)
    if n_cores <= 1:
        return best_any
    multi = [d for d in divisors if batch // d >= n_cores]
    if multi:
        best_multi = max(multi)
        if best_multi * seq_len >= 128 or best_any * seq_len < 128:
            return best_multi
    return best_any


def transformer_encoder_layer(x, prepared, block_b=None):
    (head_mask, wqkv, bqkv, wo, bo, g1, be1, w1, b1, w2, b2, g2, be2) = prepared
    B, L, D = x.shape
    assert D == D_MODEL
    # kernel specialization: head-softmax roll tree + block-diag stacks
    assert (N_HEADS * L) % 128 == 0, "kernel specialized to n_heads*seq_len % 128 == 0"
    assert N_HEADS & (N_HEADS - 1) == 0, "n_heads must be a power of two"

    n_cores = _num_tensorcores()
    if block_b is None:
        block_b = _pick_block_b(B, L, n_cores)
    assert B % block_b == 0
    n_steps = B // block_b
    hl = N_HEADS * L

    # constant index maps => parameter / mask blocks are not re-DMA'd per grid step
    full = lambda shape: pl.BlockSpec(shape, lambda b: tuple(0 for _ in shape))
    in_specs = [
        pl.BlockSpec((block_b, L, D_MODEL), lambda b: (b, 0, 0)),   # x
        full((hl, D_MODEL)),                                        # head mask
        full((D_MODEL, 3 * D_MODEL)), full((1, 3 * D_MODEL)),       # Wqkv, bqkv
        full((D_MODEL, D_MODEL)), full((1, D_MODEL)),               # Wo, bo
        full((1, D_MODEL)), full((1, D_MODEL)),                     # norm1 gamma, beta
        full((D_MODEL, DIM_FF)), full((1, DIM_FF)),                 # fc1 W, b
        full((DIM_FF, D_MODEL)), full((1, D_MODEL)),                # fc2 W, b
        full((1, D_MODEL)), full((1, D_MODEL)),                     # norm2 gamma, beta
    ]
    kernel = functools.partial(encoder_layer_kernel, block_b=block_b, seq_len=L)

    def call(dims):
        return pl.pallas_call(
            kernel,
            out_shape=jax.ShapeDtypeStruct((B, L, D_MODEL), jnp.float32),
            grid=(n_steps,),
            in_specs=in_specs,
            out_specs=pl.BlockSpec((block_b, L, D_MODEL), lambda b: (b, 0, 0)),
            compiler_params=pltpu.CompilerParams(dimension_semantics=dims),
        )(x, head_mask, wqkv, bqkv, wo, bo, g1, be1, w1, b1, w2, b2, g2, be2)

    if n_cores >= 2 and n_steps >= 2:
        # shard the batch grid axis across v7x's 2 TensorCores; fall back if unsupported
        try:
            return call((pltpu.CORE_PARALLEL,))
        except Exception:
            pass
    return call(("arbitrary",))


# ---------------- pure-JAX reference (mirrors the PyTorch forward) ----------------

def _ln_ref(x, gamma, beta):
    mu = x.mean(-1, keepdims=True)
    var = ((x - mu) ** 2).mean(-1, keepdims=True)
    return (x - mu) * jax.lax.rsqrt(var + LN_EPS) * gamma + beta


def reference(x, params):
    (wq, bq, wk, bk, wv, bv, wo, bo, g1, be1, w1, b1, w2, b2, g2, be2) = params
    B, L, D = x.shape
    Q = (x @ wq + bq).reshape(B, L, N_HEADS, HEAD_DIM).transpose(0, 2, 1, 3)
    K = (x @ wk + bk).reshape(B, L, N_HEADS, HEAD_DIM).transpose(0, 2, 1, 3)
    V = (x @ wv + bv).reshape(B, L, N_HEADS, HEAD_DIM).transpose(0, 2, 1, 3)
    energy = jnp.einsum("bhqd,bhkd->bhqk", Q, K) / jnp.sqrt(jnp.float32(HEAD_DIM))
    w = jax.nn.softmax(energy, axis=1)  # over heads (matches torch dim=1)
    out = jnp.einsum("bhqk,bhkd->bhqd", w, V)
    out = out.transpose(0, 2, 1, 3).reshape(B, L, D)
    attn = out @ wo + bo
    res = attn
    n1 = _ln_ref(res, g1, be1)
    ffn = jax.nn.relu(n1 @ w1 + b1)
    ffn = ffn @ w2 + b2
    return _ln_ref(res + ffn, g2, be2)


def init_params(key):
    ks = jax.random.split(key, 8)
    std = 0.05
    mk = lambda k, shape: (std * jax.random.normal(k, shape, jnp.float32))
    wq = mk(ks[0], (D_MODEL, D_MODEL))
    wk = mk(ks[1], (D_MODEL, D_MODEL))
    wv = mk(ks[2], (D_MODEL, D_MODEL))
    wo = mk(ks[3], (D_MODEL, D_MODEL))
    bq = mk(ks[4], (1, D_MODEL))
    bk = mk(ks[5], (1, D_MODEL))
    bv = mk(ks[6], (1, D_MODEL))
    bo = mk(ks[7], (1, D_MODEL))
    ks2 = jax.random.split(jax.random.fold_in(key, 1), 4)
    w1 = mk(ks2[0], (D_MODEL, DIM_FF))
    b1 = mk(ks2[1], (1, DIM_FF))
    w2 = mk(ks2[2], (DIM_FF, D_MODEL))
    b2 = mk(ks2[3], (1, D_MODEL))
    g1 = jnp.ones((1, D_MODEL), jnp.float32)
    be1 = jnp.zeros((1, D_MODEL), jnp.float32)
    g2 = jnp.ones((1, D_MODEL), jnp.float32)
    be2 = jnp.zeros((1, D_MODEL), jnp.float32)
    return (wq, bq, wk, bk, wv, bv, wo, bo, g1, be1, w1, b1, w2, b2, g2, be2)


if __name__ == "__main__":
    key = jax.random.PRNGKey(0)
    k_x, k_p = jax.random.split(key)

    B, L = 2, 8  # small batch / sequence; d_model=128, n_heads=16, dim_ff=256
    x = jax.random.normal(k_x, (B, L, D_MODEL), jnp.float32)
    params = init_params(k_p)

    prepared = prepare_params(params, L)
    out = transformer_encoder_layer(x, prepared)
    out = jax.block_until_ready(out)

    ref = reference(x, params)
    assert out.shape == (B, L, D_MODEL)
    err = jnp.max(jnp.abs(out - ref))
    assert jnp.allclose(out, ref, rtol=1e-4, atol=1e-4), f"max abs err = {err}"
    print("KERNEL_OK")
</pallas_src>

<mosaic_0001>
module attributes {stable_mosaic.version = 11 : i64} {
  func.func @encoder_layer_kernel(%arg0: i32, %arg1: memref<2x8x128xf32, #tpu.memory_space<vmem>>, %arg2: memref<128x128xf32, #tpu.memory_space<vmem>>, %arg3: memref<128x384xf32, #tpu.memory_space<vmem>>, %arg4: memref<1x384xf32, #tpu.memory_space<vmem>>, %arg5: memref<128x128xf32, #tpu.memory_space<vmem>>, %arg6: memref<1x128xf32, #tpu.memory_space<vmem>>, %arg7: memref<1x128xf32, #tpu.memory_space<vmem>>, %arg8: memref<1x128xf32, #tpu.memory_space<vmem>>, %arg9: memref<128x256xf32, #tpu.memory_space<vmem>>, %arg10: memref<1x256xf32, #tpu.memory_space<vmem>>, %arg11: memref<256x128xf32, #tpu.memory_space<vmem>>, %arg12: memref<1x128xf32, #tpu.memory_space<vmem>>, %arg13: memref<1x128xf32, #tpu.memory_space<vmem>>, %arg14: memref<1x128xf32, #tpu.memory_space<vmem>>, %arg15: memref<2x8x128xf32, #tpu.memory_space<vmem>>) attributes {dimension_semantics = [#tpu.dimension_semantics<arbitrary>], iteration_bounds = array<i64: 1>, scalar_prefetch = 0 : i64, scratch_operands = 0 : i64, tpu.core_type = #tpu.core_type<tc>, window_params = [{transform_indices = @transform_0, window_bounds = array<i64: 2, 8, 128>}, {pipeline_mode = #tpu.pipeline_mode<synchronous>, transform_indices = @transform_1, window_bounds = array<i64: 128, 128>}, {pipeline_mode = #tpu.pipeline_mode<synchronous>, transform_indices = @transform_2, window_bounds = array<i64: 128, 384>}, {pipeline_mode = #tpu.pipeline_mode<synchronous>, transform_indices = @transform_3, window_bounds = array<i64: 1, 384>}, {pipeline_mode = #tpu.pipeline_mode<synchronous>, transform_indices = @transform_4, window_bounds = array<i64: 128, 128>}, {pipeline_mode = #tpu.pipeline_mode<synchronous>, transform_indices = @transform_5, window_bounds = array<i64: 1, 128>}, {pipeline_mode = #tpu.pipeline_mode<synchronous>, transform_indices = @transform_6, window_bounds = array<i64: 1, 128>}, {pipeline_mode = #tpu.pipeline_mode<synchronous>, transform_indices = @transform_7, window_bounds = array<i64: 1, 128>}, {pipeline_mode = #tpu.pipeline_mode<synchronous>, transform_indices = @transform_8, window_bounds = array<i64: 128, 256>}, {pipeline_mode = #tpu.pipeline_mode<synchronous>, transform_indices = @transform_9, window_bounds = array<i64: 1, 256>}, {pipeline_mode = #tpu.pipeline_mode<synchronous>, transform_indices = @transform_10, window_bounds = array<i64: 256, 128>}, {pipeline_mode = #tpu.pipeline_mode<synchronous>, transform_indices = @transform_11, window_bounds = array<i64: 1, 128>}, {pipeline_mode = #tpu.pipeline_mode<synchronous>, transform_indices = @transform_12, window_bounds = array<i64: 1, 128>}, {pipeline_mode = #tpu.pipeline_mode<synchronous>, transform_indices = @transform_13, window_bounds = array<i64: 1, 128>}, {transform_indices = @transform_14, window_bounds = array<i64: 2, 8, 128>}]} {
    %c0 = arith.constant 0 : index
    %c0_0 = arith.constant 0 : index
    %c0_1 = arith.constant 0 : index
    %0 = vector.load %arg1[%c0, %c0_0, %c0_1] : memref<2x8x128xf32, #tpu.memory_space<vmem>>, vector<2x8x128xf32>
    %1 = vector.shape_cast %0 : vector<2x8x128xf32> to vector<16x128xf32>
    %c0_2 = arith.constant 0 : index
    %c0_3 = arith.constant 0 : index
    %2 = vector.load %arg3[%c0_2, %c0_3] : memref<128x384xf32, #tpu.memory_space<vmem>>, vector<128x384xf32>
    %cst = arith.constant dense<0.000000e+00> : vector<16x384xf32>
    %3 = tpu.matmul %1, %2, %cst {dimension_numbers = #tpu.dot_dimension_numbers<[1], [0], [0], [1], [0, 0, 1, 1], [], []>} : vector<16x128xf32>, vector<128x384xf32>, vector<16x384xf32> -> vector<16x384xf32>
    %c0_4 = arith.constant 0 : index
    %c0_5 = arith.constant 0 : index
    %4 = vector.load %arg4[%c0_4, %c0_5] : memref<1x384xf32, #tpu.memory_space<vmem>>, vector<1x384xf32>
    %5 = vector.broadcast %4 : vector<1x384xf32> to vector<16x384xf32>
    %6 = arith.addf %3, %5 : vector<16x384xf32>
    %7 = vector.extract_strided_slice %6 {offsets = [0, 0], sizes = [16, 128], strides = [1, 1]} : vector<16x384xf32> to vector<16x128xf32>
    %8 = vector.extract_strided_slice %6 {offsets = [0, 128], sizes = [16, 128], strides = [1, 1]} : vector<16x384xf32> to vector<16x128xf32>
    %9 = vector.extract_strided_slice %6 {offsets = [0, 256], sizes = [16, 128], strides = [1, 1]} : vector<16x384xf32> to vector<16x128xf32>
    %c0_6 = arith.constant 0 : index
    %c0_7 = arith.constant 0 : index
    %10 = vector.load %arg2[%c0_6, %c0_7] : memref<128x128xf32, #tpu.memory_space<vmem>>, vector<128x128xf32>
    %11 = vector.shape_cast %7 : vector<16x128xf32> to vector<2x8x128xf32>
    %12 = vector.shape_cast %8 : vector<16x128xf32> to vector<2x1x8x128xf32>
    %13 = vector.shape_cast %12 : vector<2x1x8x128xf32> to vector<2x1x8x128xf32>
    %14 = vector.broadcast %13 : vector<2x1x8x128xf32> to vector<2x16x8x128xf32>
    %15 = vector.shape_cast %14 : vector<2x16x8x128xf32> to vector<2x128x128xf32>
    %16 = vector.shape_cast %10 : vector<128x128xf32> to vector<1x128x128xf32>
    %17 = vector.broadcast %16 : vector<1x128x128xf32> to vector<2x128x128xf32>
    %18 = arith.mulf %15, %17 : vector<2x128x128xf32>
    %19 = vector.shape_cast %9 : vector<16x128xf32> to vector<2x1x8x128xf32>
    %20 = vector.shape_cast %19 : vector<2x1x8x128xf32> to vector<2x1x8x128xf32>
    %21 = vector.broadcast %20 : vector<2x1x8x128xf32> to vector<2x16x8x128xf32>
    %22 = vector.shape_cast %21 : vector<2x16x8x128xf32> to vector<2x128x128xf32>
    %23 = vector.shape_cast %10 : vector<128x128xf32> to vector<1x128x128xf32>
    %24 = vector.broadcast %23 : vector<1x128x128xf32> to vector<2x128x128xf32>
    %25 = arith.mulf %22, %24 : vector<2x128x128xf32>
    "tpu.trace_start"() <{level = 10 : i32, message = "bqd,bkd->bqk"}> : () -> ()
    %cst_8 = arith.constant dense<0.000000e+00> : vector<2x8x128xf32>
    %26 = tpu.matmul %11, %18, %cst_8 {dimension_numbers = #tpu.dot_dimension_numbers<[2], [2], [1], [1], [0, 0, 0, 1, 1, 1], [0], [0]>} : vector<2x8x128xf32>, vector<2x128x128xf32>, vector<2x8x128xf32> -> vector<2x8x128xf32>
    "tpu.trace_stop"() : () -> ()
    %27 = vector.shape_cast %26 : vector<2x8x128xf32> to vector<16x128xf32>
    %c64_i32 = arith.constant 64 : i32
    %28 = tpu.dynamic_rotate %27 by %c64_i32 dim 1 : vector<16x128xf32>, i32 -> vector<16x128xf32>
    %29 = arith.maximumf %27, %28 : vector<16x128xf32>
    %c32_i32 = arith.constant 32 : i32
    %30 = tpu.dynamic_rotate %29 by %c32_i32 dim 1 : vector<16x128xf32>, i32 -> vector<16x128xf32>
    %31 = arith.maximumf %29, %30 : vector<16x128xf32>
    %c16_i32 = arith.constant 16 : i32
    %32 = tpu.dynamic_rotate %31 by %c16_i32 dim 1 : vector<16x128xf32>, i32 -> vector<16x128xf32>
    %33 = arith.maximumf %31, %32 : vector<16x128xf32>
    %c8_i32 = arith.constant 8 : i32
    %34 = tpu.dynamic_rotate %33 by %c8_i32 dim 1 : vector<16x128xf32>, i32 -> vector<16x128xf32>
    %35 = arith.maximumf %33, %34 : vector<16x128xf32>
    %36 = arith.subf %27, %35 : vector<16x128xf32>
    %37 = math.exp %36 : vector<16x128xf32>
    %c64_i32_9 = arith.constant 64 : i32
    %38 = tpu.dynamic_rotate %37 by %c64_i32_9 dim 1 : vector<16x128xf32>, i32 -> vector<16x128xf32>
    %39 = arith.addf %37, %38 : vector<16x128xf32>
    %c32_i32_10 = arith.constant 32 : i32
    %40 = tpu.dynamic_rotate %39 by %c32_i32_10 dim 1 : vector<16x128xf32>, i32 -> vector<16x128xf32>
    %41 = arith.addf %39, %40 : vector<16x128xf32>
    %c16_i32_11 = arith.constant 16 : i32
    %42 = tpu.dynamic_rotate %41 by %c16_i32_11 dim 1 : vector<16x128xf32>, i32 -> vector<16x128xf32>
    %43 = arith.addf %41, %42 : vector<16x128xf32>
    %c8_i32_12 = arith.constant 8 : i32
    %44 = tpu.dynamic_rotate %43 by %c8_i32_12 dim 1 : vector<16x128xf32>, i32 -> vector<16x128xf32>
    %45 = arith.addf %43, %44 : vector<16x128xf32>
    %46 = arith.divf %37, %45 : vector<16x128xf32>
    %47 = vector.shape_cast %46 : vector<16x128xf32> to vector<2x8x128xf32>
    "tpu.trace_start"() <{level = 10 : i32, message = "bqk,bkd->bqd"}> : () -> ()
    %cst_13 = arith.constant dense<0.000000e+00> : vector<2x8x128xf32>
    %48 = tpu.matmul %47, %25, %cst_13 {dimension_numbers = #tpu.dot_dimension_numbers<[2], [1], [1], [2], [0, 0, 0, 1, 1, 2], [0], [0]>} : vector<2x8x128xf32>, vector<2x128x128xf32>, vector<2x8x128xf32> -> vector<2x8x128xf32>
    "tpu.trace_stop"() : () -> ()
    %49 = vector.shape_cast %48 : vector<2x8x128xf32> to vector<16x128xf32>
    %c0_14 = arith.constant 0 : index
    %c0_15 = arith.constant 0 : index
    %50 = vector.load %arg5[%c0_14, %c0_15] : memref<128x128xf32, #tpu.memory_space<vmem>>, vector<128x128xf32>
    %cst_16 = arith.constant dense<0.000000e+00> : vector<16x128xf32>
    %51 = tpu.matmul %49, %50, %cst_16 {dimension_numbers = #tpu.dot_dimension_numbers<[1], [0], [0], [1], [0, 0, 1, 1], [], []>} : vector<16x128xf32>, vector<128x128xf32>, vector<16x128xf32> -> vector<16x128xf32>
    %c0_17 = arith.constant 0 : index
    %c0_18 = arith.constant 0 : index
    %52 = vector.load %arg6[%c0_17, %c0_18] : memref<1x128xf32, #tpu.memory_space<vmem>>, vector<1x128xf32>
    %53 = vector.broadcast %52 : vector<1x128xf32> to vector<16x128xf32>
    %54 = arith.addf %51, %53 : vector<16x128xf32>
    %c0_19 = arith.constant 0 : index
    %c0_20 = arith.constant 0 : index
    %55 = vector.load %arg7[%c0_19, %c0_20] : memref<1x128xf32, #tpu.memory_space<vmem>>, vector<1x128xf32>
    %c0_21 = arith.constant 0 : index
    %c0_22 = arith.constant 0 : index
    %56 = vector.load %arg8[%c0_21, %c0_22] : memref<1x128xf32, #tpu.memory_space<vmem>>, vector<1x128xf32>
    %cst_23 = arith.constant dense<0.000000e+00> : vector<16xf32>
    %57 = vector.multi_reduction <add>, %54, %cst_23 [1] : vector<16x128xf32> to vector<16xf32>
    %58 = vector.shape_cast %57 : vector<16xf32> to vector<16x1xf32>
    %cst_24 = arith.constant 1.280000e+02 : f32
    %59 = vector.broadcast %cst_24 : f32 to vector<16x1xf32>
    %60 = arith.divf %58, %59 : vector<16x1xf32>
    %61 = arith.mulf %54, %54 : vector<16x128xf32>
    %cst_25 = arith.constant dense<0.000000e+00> : vector<16xf32>
    %62 = vector.multi_reduction <add>, %61, %cst_25 [1] : vector<16x128xf32> to vector<16xf32>
    %63 = vector.shape_cast %62 : vector<16xf32> to vector<16x1xf32>
    %cst_26 = arith.constant 1.280000e+02 : f32
    %64 = vector.broadcast %cst_26 : f32 to vector<16x1xf32>
    %65 = arith.divf %63, %64 : vector<16x1xf32>
    %66 = arith.mulf %60, %60 : vector<16x1xf32>
    %67 = arith.subf %65, %66 : vector<16x1xf32>
    %68 = vector.broadcast %60 : vector<16x1xf32> to vector<16x128xf32>
    %69 = arith.subf %54, %68 : vector<16x128xf32>
    %cst_27 = arith.constant 9.99999974E-6 : f32
    %70 = vector.broadcast %cst_27 : f32 to vector<16x1xf32>
    %71 = arith.addf %67, %70 : vector<16x1xf32>
    %72 = math.rsqrt %71 : vector<16x1xf32>
    %73 = vector.broadcast %72 : vector<16x1xf32> to vector<16x128xf32>
    %74 = arith.mulf %69, %73 : vector<16x128xf32>
    %75 = vector.broadcast %55 : vector<1x128xf32> to vector<16x128xf32>
    %76 = arith.mulf %74, %75 : vector<16x128xf32>
    %77 = vector.broadcast %56 : vector<1x128xf32> to vector<16x128xf32>
    %78 = arith.addf %76, %77 : vector<16x128xf32>
    %c0_28 = arith.constant 0 : index
    %c0_29 = arith.constant 0 : index
    %79 = vector.load %arg9[%c0_28, %c0_29] : memref<128x256xf32, #tpu.memory_space<vmem>>, vector<128x256xf32>
    %cst_30 = arith.constant dense<0.000000e+00> : vector<16x256xf32>
    %80 = tpu.matmul %78, %79, %cst_30 {dimension_numbers = #tpu.dot_dimension_numbers<[1], [0], [0], [1], [0, 0, 1, 1], [], []>} : vector<16x128xf32>, vector<128x256xf32>, vector<16x256xf32> -> vector<16x256xf32>
    %c0_31 = arith.constant 0 : index
    %c0_32 = arith.constant 0 : index
    %81 = vector.load %arg10[%c0_31, %c0_32] : memref<1x256xf32, #tpu.memory_space<vmem>>, vector<1x256xf32>
    %82 = vector.broadcast %81 : vector<1x256xf32> to vector<16x256xf32>
    %83 = arith.addf %80, %82 : vector<16x256xf32>
    %cst_33 = arith.constant 0.000000e+00 : f32
    %84 = vector.broadcast %cst_33 : f32 to vector<16x256xf32>
    %85 = arith.maximumf %83, %84 : vector<16x256xf32>
    %c0_34 = arith.constant 0 : index
    %c0_35 = arith.constant 0 : index
    %86 = vector.load %arg11[%c0_34, %c0_35] : memref<256x128xf32, #tpu.memory_space<vmem>>, vector<256x128xf32>
    %cst_36 = arith.constant dense<0.000000e+00> : vector<16x128xf32>
    %87 = tpu.matmul %85, %86, %cst_36 {dimension_numbers = #tpu.dot_dimension_numbers<[1], [0], [0], [1], [0, 0, 1, 1], [], []>} : vector<16x256xf32>, vector<256x128xf32>, vector<16x128xf32> -> vector<16x128xf32>
    %c0_37 = arith.constant 0 : index
    %c0_38 = arith.constant 0 : index
    %88 = vector.load %arg12[%c0_37, %c0_38] : memref<1x128xf32, #tpu.memory_space<vmem>>, vector<1x128xf32>
    %89 = vector.broadcast %88 : vector<1x128xf32> to vector<16x128xf32>
    %90 = arith.addf %87, %89 : vector<16x128xf32>
    %91 = arith.addf %54, %90 : vector<16x128xf32>
    %c0_39 = arith.constant 0 : index
    %c0_40 = arith.constant 0 : index
    %92 = vector.load %arg13[%c0_39, %c0_40] : memref<1x128xf32, #tpu.memory_space<vmem>>, vector<1x128xf32>
    %c0_41 = arith.constant 0 : index
    %c0_42 = arith.constant 0 : index
    %93 = vector.load %arg14[%c0_41, %c0_42] : memref<1x128xf32, #tpu.memory_space<vmem>>, vector<1x128xf32>
    %cst_43 = arith.constant dense<0.000000e+00> : vector<16xf32>
    %94 = vector.multi_reduction <add>, %91, %cst_43 [1] : vector<16x128xf32> to vector<16xf32>
    %95 = vector.shape_cast %94 : vector<16xf32> to vector<16x1xf32>
    %cst_44 = arith.constant 1.280000e+02 : f32
    %96 = vector.broadcast %cst_44 : f32 to vector<16x1xf32>
    %97 = arith.divf %95, %96 : vector<16x1xf32>
    %98 = arith.mulf %91, %91 : vector<16x128xf32>
    %cst_45 = arith.constant dense<0.000000e+00> : vector<16xf32>
    %99 = vector.multi_reduction <add>, %98, %cst_45 [1] : vector<16x128xf32> to vector<16xf32>
    %100 = vector.shape_cast %99 : vector<16xf32> to vector<16x1xf32>
    %cst_46 = arith.constant 1.280000e+02 : f32
    %101 = vector.broadcast %cst_46 : f32 to vector<16x1xf32>
    %102 = arith.divf %100, %101 : vector<16x1xf32>
    %103 = arith.mulf %97, %97 : vector<16x1xf32>
    %104 = arith.subf %102, %103 : vector<16x1xf32>
    %105 = vector.broadcast %97 : vector<16x1xf32> to vector<16x128xf32>
    %106 = arith.subf %91, %105 : vector<16x128xf32>
    %cst_47 = arith.constant 9.99999974E-6 : f32
    %107 = vector.broadcast %cst_47 : f32 to vector<16x1xf32>
    %108 = arith.addf %104, %107 : vector<16x1xf32>
    %109 = math.rsqrt %108 : vector<16x1xf32>
    %110 = vector.broadcast %109 : vector<16x1xf32> to vector<16x128xf32>
    %111 = arith.mulf %106, %110 : vector<16x128xf32>
    %112 = vector.broadcast %92 : vector<1x128xf32> to vector<16x128xf32>
    %113 = arith.mulf %111, %112 : vector<16x128xf32>
    %114 = vector.broadcast %93 : vector<1x128xf32> to vector<16x128xf32>
    %115 = arith.addf %113, %114 : vector<16x128xf32>
    %116 = vector.shape_cast %115 : vector<16x128xf32> to vector<2x8x128xf32>
    %c0_48 = arith.constant 0 : index
    %c0_49 = arith.constant 0 : index
    %c0_50 = arith.constant 0 : index
    %117 = vector.load %arg15[%c0_48, %c0_49, %c0_50] : memref<2x8x128xf32, #tpu.memory_space<vmem>>, vector<2x8x128xf32>
    tpu.vector_store %arg15[%c0_48, %c0_49, %c0_50], %116 {strides = array<i32>} : memref<2x8x128xf32, #tpu.memory_space<vmem>>, vector<2x8x128xf32>,
    return
  }
  func.func @transform_0(%arg0: i32) -> (i32, i32, i32) {
    %c0_i32 = arith.constant 0 : i32
    %c0_i32_0 = arith.constant 0 : i32
    %c0_i32_1 = arith.constant 0 : i32
    return %arg0, %c0_i32, %c0_i32_0 : i32, i32, i32
  }
  func.func @transform_1(%arg0: i32) -> (i32, i32) {
    %c0_i32 = arith.constant 0 : i32
    %c0_i32_0 = arith.constant 0 : i32
    %c0_i32_1 = arith.constant 0 : i32
    return %c0_i32, %c0_i32_0 : i32, i32
  }
  func.func @transform_2(%arg0: i32) -> (i32, i32) {
    %c0_i32 = arith.constant 0 : i32
    %c0_i32_0 = arith.constant 0 : i32
    %c0_i32_1 = arith.constant 0 : i32
    return %c0_i32, %c0_i32_0 : i32, i32
  }
  func.func @transform_3(%arg0: i32) -> (i32, i32) {
    %c0_i32 = arith.constant 0 : i32
    %c0_i32_0 = arith.constant 0 : i32
    %c0_i32_1 = arith.constant 0 : i32
    return %c0_i32, %c0_i32_0 : i32, i32
  }
  func.func @transform_4(%arg0: i32) -> (i32, i32) {
    %c0_i32 = arith.constant 0 : i32
    %c0_i32_0 = arith.constant 0 : i32
    %c0_i32_1 = arith.constant 0 : i32
    return %c0_i32, %c0_i32_0 : i32, i32
  }
  func.func @transform_5(%arg0: i32) -> (i32, i32) {
    %c0_i32 = arith.constant 0 : i32
    %c0_i32_0 = arith.constant 0 : i32
    %c0_i32_1 = arith.constant 0 : i32
    return %c0_i32, %c0_i32_0 : i32, i32
  }
  func.func @transform_6(%arg0: i32) -> (i32, i32) {
    %c0_i32 = arith.constant 0 : i32
    %c0_i32_0 = arith.constant 0 : i32
    %c0_i32_1 = arith.constant 0 : i32
    return %c0_i32, %c0_i32_0 : i32, i32
  }
  func.func @transform_7(%arg0: i32) -> (i32, i32) {
    %c0_i32 = arith.constant 0 : i32
    %c0_i32_0 = arith.constant 0 : i32
    %c0_i32_1 = arith.constant 0 : i32
    return %c0_i32, %c0_i32_0 : i32, i32
  }
  func.func @transform_8(%arg0: i32) -> (i32, i32) {
    %c0_i32 = arith.constant 0 : i32
    %c0_i32_0 = arith.constant 0 : i32
    %c0_i32_1 = arith.constant 0 : i32
    return %c0_i32, %c0_i32_0 : i32, i32
  }
  func.func @transform_9(%arg0: i32) -> (i32, i32) {
    %c0_i32 = arith.constant 0 : i32
    %c0_i32_0 = arith.constant 0 : i32
    %c0_i32_1 = arith.constant 0 : i32
    return %c0_i32, %c0_i32_0 : i32, i32
  }
  func.func @transform_10(%arg0: i32) -> (i32, i32) {
    %c0_i32 = arith.constant 0 : i32
    %c0_i32_0 = arith.constant 0 : i32
    %c0_i32_1 = arith.constant 0 : i32
    return %c0_i32, %c0_i32_0 : i32, i32
  }
  func.func @transform_11(%arg0: i32) -> (i32, i32) {
    %c0_i32 = arith.constant 0 : i32
    %c0_i32_0 = arith.constant 0 : i32
    %c0_i32_1 = arith.constant 0 : i32
    return %c0_i32, %c0_i32_0 : i32, i32
  }
  func.func @transform_12(%arg0: i32) -> (i32, i32) {
    %c0_i32 = arith.constant 0 : i32
    %c0_i32_0 = arith.constant 0 : i32
    %c0_i32_1 = arith.constant 0 : i32
    return %c0_i32, %c0_i32_0 : i32, i32
  }
  func.func @transform_13(%arg0: i32) -> (i32, i32) {
    %c0_i32 = arith.constant 0 : i32
    %c0_i32_0 = arith.constant 0 : i32
    %c0_i32_1 = arith.constant 0 : i32
    return %c0_i32, %c0_i32_0 : i32, i32
  }
  func.func @transform_14(%arg0: i32) -> (i32, i32, i32) {
    %c0_i32 = arith.constant 0 : i32
    %c0_i32_0 = arith.constant 0 : i32
    %c0_i32_1 = arith.constant 0 : i32
    return %arg0, %c0_i32, %c0_i32_0 : i32, i32, i32
  }
}

</mosaic_0001>

<bundles_post_ra>
// kernel: tpu_custom_call.1
= control target key start
LH: loop header
LB: loop body
LE: loop exit
PB: predicated region body
PF: predicated region fallthrough
CT: control target
= control target key end

     0   :  { %19 = vsyncpa [#allocation3], 0  ;;  %s2581_s0 = inlined_call_operand.hbm [shape: f32[2,8,128], index: 0, kind: input, shape index: {}]   ;;  %s2582_s1 = inlined_call_operand.hbm [shape: f32[128,128], index: 1, kind: input, shape index: {}]   ;;  %s2583_s2 = inlined_call_operand.hbm [shape: f32[128,384], index: 2, kind: input, shape index: {}]   ;;  %s2584_s3 = inlined_call_operand.vmem [shape: f32[1,384], index: 3, kind: input, shape index: {}]   ;;  %s2585_s4 = inlined_call_operand.hbm [shape: f32[128,128], index: 4, kind: input, shape index: {}]   ;;  %s2586_s5 = inlined_call_operand.vmem [shape: f32[1,128], index: 5, kind: input, shape index: {}]   ;;  %s2587_s6 = inlined_call_operand.vmem [shape: f32[1,128], index: 6, kind: input, shape index: {}]   ;;  %s2588_s7 = inlined_call_operand.vmem [shape: f32[1,128], index: 7, kind: input, shape index: {}]   ;;  %s2589_s8 = inlined_call_operand.hbm [shape: f32[128,256], index: 8, kind: input, shape index: {}]   ;;  %s2590_s9 = inlined_call_operand.vmem [shape: f32[1,256], index: 9, kind: input, shape index: {}]   ;;  %s2591_s10 = inlined_call_operand.hbm [shape: f32[256,128], index: 10, kind: input, shape index: {}]   ;;  %s2592_s11 = inlined_call_operand.vmem [shape: f32[1,128], index: 11, kind: input, shape index: {}]   ;;  %s2593_s12 = inlined_call_operand.vmem [shape: f32[1,128], index: 12, kind: input, shape index: {}]   ;;  %s2594_s13 = inlined_call_operand.vmem [shape: f32[1,128], index: 13, kind: input, shape index: {}]   ;;  %s2595_s14 = inlined_call_operand.hbm [shape: f32[2,8,128], index: 14, kind: output, shape index: {}]  }
   0x1   :  { %20 = vsyncpa [#allocation6], 0 }
   0x2   :  { %21 = vsyncpa [#allocation9], 0 }
   0x3   :  { %22 = vsyncpa [#allocation12], 0 }
   0x4   :  { %23 = vsyncpa [#allocation4], 0  ;;  %s2045_s29 = smov [#allocation5]   ;;  %s2046_s15 = smov [#allocation8]  }
   0x5   :  { %s41_s30 = sshll.u32 %s2045_s29, 4  ;;  %s67_s16 = sshll.u32 %s2046_s15, 4  ;;  %s42_s30 = int_to_ptr.vmem [resolvable:$true] %s41_s30  ;;  %s2138_s16 = int_to_ptr.vmem [resolvable:$true] %s67_s16 }
   0x6   :  { %s1881_s19 = scalar_lea.hbm %s2582_s1, 2048 }
   0x7   :  { %p1882_p0 = scmp.ne.s32.totalorder %s2582_s1, %s1881_s19  ;;  %p1885_p1 = scmp.lt.u32.totalorder %s1881_s19, %s2582_s1 }
   0x9   :  { %p1887_p2 = pnand %p1885_p1, %p1882_p0 }
   0xb   :  { %1890 = shalt.err (!%p1887_p2)
}
   0xc   :  { %s1891_s24 = scalar_lea.vmem %s42_s30, 2048  ;;  %p1896_p4 = scmp.lt.s32.totalorder %s42_s30, %s42_s30 }
   0xd   :  { %p1892_p3 = scmp.ne.s32.totalorder %s42_s30, %s1891_s24  ;;  %p1897_p5 = scmp.lt.s32.totalorder %s1891_s24, %s1891_s24 }
   0xf   :  { %p1898_p6 = por %p1897_p5, %p1896_p4 }
  0x11   :  { %p1899_p7 = pnand %p1898_p6, %p1892_p3 }
  0x13   :  { %1902 = shalt.err (!%p1899_p7)
}
  0x14   :  { %s2047_s25 = smov 128   ;;  %s2048_s26 = smov 8  }
  0x15   :  { %47 = dma.hbm_to_vmem [thread:$0]  %s2582_s1, 2048, %s42_s30, [#allocation6], %s2047_s25, %s2047_s25, %s2048_s26  }
  0x16   :  { %s1903_s17 = scalar_lea.hbm %s2585_s4, 2048 }
  0x17   :  { %p1904_p8 = scmp.ne.s32.totalorder %s2585_s4, %s1903_s17  ;;  %p1907_p9 = scmp.lt.u32.totalorder %s1903_s17, %s2585_s4 }
  0x19   :  { %p1909_p10 = pnand %p1907_p9, %p1904_p8 }
  0x1b   :  { %1912 = shalt.err (!%p1909_p10)
}
  0x1c   :  { %s1913_s22 = scalar_lea.vmem %s2138_s16, 2048  ;;  %p1918_p12 = scmp.lt.s32.totalorder %s2138_s16, %s2138_s16 }
  0x1d   :  { %p1914_p11 = scmp.ne.s32.totalorder %s2138_s16, %s1913_s22  ;;  %p1919_p13 = scmp.lt.s32.totalorder %s1913_s22, %s1913_s22 }
  0x1f   :  { %p1920_p0 = por %p1919_p13, %p1918_p12 }
  0x21   :  { %p1921_p1 = pnand %p1920_p0, %p1914_p11 }
  0x23   :  { %1924 = shalt.err (!%p1921_p1)
}
  0x24   :  { %73 = dma.hbm_to_vmem [thread:$0]  %s2585_s4, 2048, %s2138_s16, [#allocation9], %s2047_s25, %s2047_s25, %s2048_s26  }
  0x25   :  { %s2049_s23 = smov [#allocation2]   ;;  %s2050_s27 = smov [#allocation7]  }
  0x26   :  { %s29_s24 = sshll.u32 %s2049_s23, 4  ;;  %s53_s28 = sshll.u32 %s2050_s27, 4  ;;  %s30_s24 = int_to_ptr.vmem [resolvable:$true] %s29_s24  ;;  %s2175_s28 = int_to_ptr.vmem [resolvable:$true] %s53_s28 }
  0x27   :  { %s1925_s17 = scalar_lea.hbm %s2581_s0, 256 }
  0x28   :  { %p1926_p2 = scmp.ne.s32.totalorder %s2581_s0, %s1925_s17  ;;  %p1929_p3 = scmp.lt.u32.totalorder %s1925_s17, %s2581_s0 }
  0x2a   :  { %p1931_p4 = pnand %p1929_p3, %p1926_p2 }
  0x2c   :  { %1934 = shalt.err (!%p1931_p4)
}
  0x2d   :  { %s1935_s4 = scalar_lea.vmem %s30_s24, 256  ;;  %p1940_p6 = scmp.lt.s32.totalorder %s30_s24, %s30_s24 }
  0x2e   :  { %p1936_p5 = scmp.ne.s32.totalorder %s30_s24, %s1935_s4  ;;  %p1941_p7 = scmp.lt.s32.totalorder %s1935_s4, %s1935_s4 }
  0x30   :  { %p1942_p8 = por %p1941_p7, %p1940_p6 }
  0x32   :  { %p1943_p9 = pnand %p1942_p8, %p1936_p5 }
  0x34   :  { %1946 = shalt.err (!%p1943_p9)
}
  0x35   :  { %35 = dma.hbm_to_vmem [thread:$0]  %s2581_s0, 256, %s30_s24, [#allocation3], %s2047_s25, %s2047_s25, %s2048_s26  }
  0x36   :  { %s1947_s23 = scalar_lea.hbm %s2583_s2, 6144 }
  0x37   :  { %p1948_p10 = scmp.ne.s32.totalorder %s2583_s2, %s1947_s23  ;;  %p1951_p11 = scmp.lt.u32.totalorder %s1947_s23, %s2583_s2 }
  0x39   :  { %p1953_p12 = pnand %p1951_p11, %p1948_p10 }
  0x3b   :  { %1956 = shalt.err (!%p1953_p12)
}
  0x3c   :  { %s1957_s18 = scalar_lea.vmem %s2175_s28, 6144  ;;  %p1962_p0 = scmp.lt.s32.totalorder %s2175_s28, %s2175_s28 }
  0x3d   :  { %p1958_p13 = scmp.ne.s32.totalorder %s2175_s28, %s1957_s18  ;;  %p1963_p1 = scmp.lt.s32.totalorder %s1957_s18, %s1957_s18 }
  0x3f   :  { %p1964_p2 = por %p1963_p1, %p1962_p0 }
  0x41   :  { %p1965_p3 = pnand %p1964_p2, %p1958_p13 }
  0x43   :  { %1968 = shalt.err (!%p1965_p3)
}
  0x44   :  { %s2051_s0 = smov 384   ;;  %s2052_s24 = smov 24  }
  0x45   :  { %59 = dma.hbm_to_vmem [thread:$0]  %s2583_s2, 6144, %s2175_s28, [#allocation6], %s2051_s0, %s2051_s0, %s2052_s24  }
  0x46   :  { %s2053_s21 = smov [#allocation10]   ;;  %s1969_s1 = scalar_lea.hbm %s2589_s8, 4096 }
  0x47   :  { %s85_s4 = sshll.u32 %s2053_s21, 4  ;;  %p1970_p4 = scmp.ne.s32.totalorder %s2589_s8, %s1969_s1  ;;  %s86_s4 = int_to_ptr.vmem [resolvable:$true] %s85_s4 }
  0x48   :  { %p1973_p5 = scmp.lt.u32.totalorder %s1969_s1, %s2589_s8 }
  0x4a   :  { %p1975_p6 = pnand %p1973_p5, %p1970_p4 }
  0x4c   :  { %1978 = shalt.err (!%p1975_p6)
}
  0x4d   :  { %s1979_s15 = scalar_lea.vmem %s86_s4, 4096  ;;  %p1984_p8 = scmp.lt.s32.totalorder %s86_s4, %s86_s4 }
  0x4e   :  { %p1980_p7 = scmp.ne.s32.totalorder %s86_s4, %s1979_s15  ;;  %p1985_p9 = scmp.lt.s32.totalorder %s1979_s15, %s1979_s15 }
  0x50   :  { %p1986_p10 = por %p1985_p9, %p1984_p8 }
  0x52   :  { %p1987_p11 = pnand %p1986_p10, %p1980_p7 }
  0x54   :  { %1990 = shalt.err (!%p1987_p11)
}
  0x55   :  { %s2054_s2 = smov 256   ;;  %s2055_s28 = smov 16  }
  0x56   :  { %91 = dma.hbm_to_vmem [thread:$0]  %s2589_s8, 4096, %s86_s4, [#allocation9], %s2054_s2, %s2054_s2, %s2055_s28  }
  0x57   :  { %s2056_s0 = smov [#allocation11]   ;;  %s1991_s21 = scalar_lea.hbm %s2591_s10, 4096 }
  0x58   :  { %s99_s24 = sshll.u32 %s2056_s0, 4  ;;  %p1992_p12 = scmp.ne.s32.totalorder %s2591_s10, %s1991_s21  ;;  %s100_s24 = int_to_ptr.vmem [resolvable:$true] %s99_s24 }
  0x59   :  { %p1995_p13 = scmp.lt.u32.totalorder %s1991_s21, %s2591_s10 }
  0x5b   :  { %p1997_p0 = pnand %p1995_p13, %p1992_p12 }
  0x5d   :  { %2000 = shalt.err (!%p1997_p0)
}
  0x5e   :  { %s2001_s23 = scalar_lea.vmem %s100_s24, 4096  ;;  %p2006_p2 = scmp.lt.s32.totalorder %s100_s24, %s100_s24 }
  0x5f   :  { %p2002_p1 = scmp.ne.s32.totalorder %s100_s24, %s2001_s23  ;;  %p2007_p3 = scmp.lt.s32.totalorder %s2001_s23, %s2001_s23 }
  0x61   :  { %p2008_p4 = por %p2007_p3, %p2006_p2 }
  0x63   :  { %p2009_p5 = pnand %p2008_p4, %p2002_p1 }
  0x65   :  { %2012 = shalt.err (!%p2009_p5)
}
  0x66   :  { %105 = dma.hbm_to_vmem [thread:$0]  %s2591_s10, 4096, %s100_s24, [#allocation12], %s2047_s25, %s2047_s25, %s2048_s26  }
  0x67   :  { %2035 = dma.done.wait [#allocation3], 256  }
  0x68   :  { %2036 = vsyncadd [#allocation3], 4294967040 }
  0x69   :  { %2037 = dma.done.wait [#allocation6], 8192  }
  0x6a   :  { %2038 = vsyncadd [#allocation6], 4294959104 }
  0x6b   :  { %2039 = dma.done.wait [#allocation9], 6144  }
  0x6c   :  { %2040 = vsyncadd [#allocation9], 4294961152 }
  0x6d   :  { %2041 = dma.done.wait [#allocation12], 4096  }
  0x6e   :  { %2042 = vsyncadd [#allocation12], 4294963200  ;;  %v2057_v0 = vmov 0.0   ;;  %v133_v1 = vld [vmem:[#allocation7 + $0x8] sm:$0xff]  ;;  %v136_v2 = vld [vmem:[#allocation7 + $0x20] sm:$0xff]  ;;  %vm2059_vm0 = vmmov 0  }
  0x6f   :  { %261 = vmatprep.mubr.f32.mxu0 %v2057_v0  ;;  %v132_v3 = vld [vmem:[#allocation7] sm:$0xff]  ;;  %v1575_v4 = vpack.c.bf16 %v136_v2, %v133_v1  ;;  %v135_v5 = vld [vmem:[#allocation7 + $0x18] sm:$0xff]  ;;  %v142_v7 = vld [vmem:[#allocation7 + $0x50] sm:$0xff]  ;;  %s2061_s29 = smov 32   ;;  %s2062_s21 = smov [#allocation13]  }
  0x70   :  { %v139_v6 = vld [vmem:[#allocation7 + $0x38] sm:$0xff]  ;;  %v1577_v8 = vpack.c.bf16 %v135_v5, %v132_v3  ;;  %v138_v10 = vld [vmem:[#allocation7 + $0x30] sm:$0xff]  ;;  %v141_v11 = vld [vmem:[#allocation7 + $0x48] sm:$0xff]  ;;  %s1202_s16 = sshll.u32 %s2062_s21, 4  ;;  %s1203_s16 = int_to_ptr.vmem [resolvable:$true] %s1202_s16 }
  0x71   :  { %v1579_v9 = vpack.c.bf16 %v142_v7, %v139_v6  ;;  %v145_v12 = vld [vmem:[#allocation7 + $0x68] sm:$0xff]  ;;  %1576 = vmatprep.subr.bf16.mxu0 %v1575_v4  ;;  %v148_v13 = vld [vmem:[#allocation7 + $0x80] sm:$0xff]  ;;  %v1581_v14 = vpack.c.bf16 %v141_v11, %v138_v10  ;;  %v147_v17 = vld [vmem:[#allocation7 + $0x78] sm:$0xff]  ;;  %s2013_s22 = scalar_lea.vmem %s1203_s16, 256  ;;  %p2018_p7 = scmp.lt.s32.totalorder %s1203_s16, %s1203_s16 }
  0x72   :  { %1578 = vmatpush1.bf16.msra.mxu0 %v1577_v8  ;;  %v1583_v15 = vpack.c.bf16 %v148_v13, %v145_v12  ;;  %v144_v16 = vld [vmem:[#allocation7 + $0x60] sm:$0xff]  ;;  %v151_v18 = vld [vmem:[#allocation7 + $0x98] sm:$0xff]  ;;  %v154_v19 = vld [vmem:[#allocation7 + $0xb0] sm:$0xff]  ;;  %v2058_v12 = vmov 0.0|0.0   ;;  %v182_v13 = vlaneseq  ;;  %p2014_p6 = scmp.ne.s32.totalorder %s1203_s16, %s2013_s22  ;;  %p2019_p8 = scmp.lt.s32.totalorder %s2013_s22, %s2013_s22 }
  0x73   :  { %1580 = vmatprep.subr.bf16.mxu0 %v1579_v9  ;;  %v1585_v20 = vpack.c.bf16 %v147_v17, %v144_v16  ;;  %v1587_v21 = vpack.c.bf16 %v154_v19, %v151_v18  ;;  %v150_v22 = vld [vmem:[#allocation7 + $0x90] sm:$0xff]  ;;  %v153_v23 = vld [vmem:[#allocation7 + $0xa8] sm:$0xff]  ;;  %v160_v25 = vld [vmem:[#allocation7 + $0xe0] sm:$0xff] }
  0x74   :  { %v157_v24 = vld [vmem:[#allocation7 + $0xc8] sm:$0xff]  ;;  %v2238_v26 = vld [vmem:[#allocation2] sm:$0xff]  ;;  %v1589_v29 = vpack.c.bf16 %v153_v23, %v150_v22  ;;  %v156_v30 = vld [vmem:[#allocation7 + $0xc0] sm:$0xff]  ;;  %p2020_p9 = por %p2019_p8, %p2018_p7 }
  0x75   :  { %v134_v27 = vld [vmem:[#allocation7 + $0x10] sm:$0xff]  ;;  %v137_v28 = vld [vmem:[#allocation7 + $0x28] sm:$0xff]  ;;  %1397 = vmatprep.mubr.f32.mxu1 %v2238_v26  ;;  %v140_v32 = vld [vmem:[#allocation7 + $0x40] sm:$0xff]  ;;  %v1591_v34 = vpack.c.bf16 %v160_v25, %v157_v24 }
  0x76   :  { %1582 = vmatpush1.bf16.msra.mxu0 %v1581_v14  ;;  %v1607_v31 = vpack.c.bf16 %v137_v28, %v134_v27  ;;  %v143_v33 = vld [vmem:[#allocation7 + $0x58] sm:$0xff]  ;;  %v146_v37 = vld [vmem:[#allocation7 + $0x70] sm:$0xff]  ;;  %v149_v38 = vld [vmem:[#allocation7 + $0x88] sm:$0xff]  ;;  %v2249_v14 = vshrl.u32 %v182_v13, 7  ;;  %p2021_p10 = pnand %p2020_p9, %p2014_p6 }
  0x77   :  { %1584 = vmatprep.subr.bf16.mxu0 %v1583_v15  ;;  %v159_v35 = vld [vmem:[#allocation7 + $0xd8] sm:$0xff]  ;;  %v1611_v36 = vpack.c.bf16 %v143_v33, %v140_v32  ;;  %v166_v40 = vld [vmem:[#allocation7 + $0x110] sm:$0xff]  ;;  %v1615_v43 = vpack.c.bf16 %v149_v38, %v146_v37  ;;  %v165_v45 = vld [vmem:[#allocation7 + $0x108] sm:$0xff] }
  0x78   :  { %v163_v39 = vld [vmem:[#allocation7 + $0xf8] sm:$0xff]  ;;  %1608 = vmatprep.subr.bf16.mxu1 %v1607_v31  ;;  %v1593_v41 = vpack.c.bf16 %v159_v35, %v156_v30  ;;  %v162_v42 = vld [vmem:[#allocation7 + $0xf0] sm:$0xff]  ;;  %v152_v46 = vld [vmem:[#allocation7 + $0xa0] sm:$0xff]  ;;  %v188_v15 = vsub.s32 1, %v2249_v14 }
  0x79   :  { %1610 = vmatpush3.bf16.msra.mxu1 %v1607_v31  ;;  %v1595_v44 = vpack.c.bf16 %v166_v40, %v163_v39  ;;  %v155_v47 = vld [vmem:[#allocation7 + $0xb8] sm:$0xff]  ;;  %v169_v48 = vld [vmem:[#allocation7 + $0x128] sm:$0xff]  ;;  %v172_v49 = vld [vmem:[#allocation7 + $0x140] sm:$0xff]  ;;  %v1597_v50 = vpack.c.bf16 %v165_v45, %v162_v42  ;;  %v192_v31 = vsub.s32 2, %v2249_v14 }
  0x7a   :  { %1586 = vmatpush1.bf16.msra.mxu0 %v1585_v20  ;;  %1612 = vmatprep.subr.bf16.mxu1 %v1611_v36  ;;  %v168_v51 = vld [vmem:[#allocation7 + $0x120] sm:$0xff]  ;;  %v1619_v52 = vpack.c.bf16 %v155_v47, %v152_v46  ;;  %v1599_v53 = vpack.c.bf16 %v172_v49, %v169_v48  ;;  %v171_v54 = vld [vmem:[#allocation7 + $0x138] sm:$0xff]  ;;  %v158_v55 = vld [vmem:[#allocation7 + $0xd0] sm:$0xff] }
  0x7b   :  { %1588 = vmatprep.subr.bf16.mxu0 %v1587_v21  ;;  %v161_v56 = vld [vmem:[#allocation7 + $0xe8] sm:$0xff]  ;;  %v175_v57 = vld [vmem:[#allocation7 + $0x158] sm:$0xff]  ;;  %v178_v58 = vld [vmem:[#allocation7 + $0x170] sm:$0xff]  ;;  %v1601_v59 = vpack.c.bf16 %v171_v54, %v168_v51 }
  0x7c   :  { %v174_v60 = vld [vmem:[#allocation7 + $0x150] sm:$0xff]  ;;  %v1623_v61 = vpack.c.bf16 %v161_v56, %v158_v55  ;;  %v1603_v62 = vpack.c.bf16 %v178_v58, %v175_v57  ;;  %v177_v63 = vld [vmem:[#allocation7 + $0x168] sm:$0xff]  ;;  %v164_v1 = vld [vmem:[#allocation7 + $0x100] sm:$0xff] }
  0x7d   :  { %1614 = vmatpush3.bf16.msra.mxu1 %v1611_v36  ;;  %v167_v2 = vld [vmem:[#allocation7 + $0x118] sm:$0xff]  ;;  %v1605_v3 = vpack.c.bf16 %v177_v63, %v174_v60  ;;  %v170_v5 = vld [vmem:[#allocation7 + $0x130] sm:$0xff]  ;;  %v173_v6 = vld [vmem:[#allocation7 + $0x148] sm:$0xff] }
  0x7e   :  { %1590 = vmatpush1.bf16.msra.mxu0 %v1589_v29  ;;  %1616 = vmatprep.subr.bf16.mxu1 %v1615_v43  ;;  %v1627_v4 = vpack.c.bf16 %v167_v2, %v164_v1  ;;  %v1631_v7 = vpack.c.bf16 %v173_v6, %v170_v5  ;;  %v176_v8 = vld [vmem:[#allocation7 + $0x160] sm:$0xff]  ;;  %v179_v9 = vld [vmem:[#allocation7 + $0x178] sm:$0xff]  ;;  %v2255_v16 = vld [vmem:[%s2584_s3] sm:$0x7]  ;;  %s2060_s3 = smov 64  }
  0x7f   :  { %1592 = vmatprep.subr.bf16.mxu0 %v1591_v34  ;;  %v131_v10 = vld [vmem:[#allocation2 + $0x8] sm:$0xff]  ;;  %v1635_v11 = vpack.c.bf16 %v179_v9, %v176_v8  ;;  %v189_v17 = vrot.slane %v2255_v16, %v188_v15  ;;  %v349_v20 = vld [vmem:[#allocation5] sm:$0xff]  ;;  %v350_v21 = vld [vmem:[#allocation5 + $0x8] sm:$0xff]  ;;  %v193_v37 = vrot.slane %v2255_v16, %v192_v31 }
  0x80   :  { %v2270_v29 = vld [vmem:[#allocation5 + $0x10] sm:$0xff]  ;;  %v2272_v30 = vld [vmem:[#allocation5 + $0x18] sm:$0xff]  ;;  %v2348_v8 = vld [vmem:[#allocation5 + $0x48] sm:$0xff] }
  0x81   :  { %1618 = vmatpush3.bf16.msra.mxu1 %v1615_v43  ;;  %v2288_v43 = vld [vmem:[#allocation5 + $0x20] sm:$0xff]  ;;  %v2334_v63 = vld [vmem:[#allocation5 + $0x38] sm:$0xff] }
  0x82   :  { %1594 = vmatpush1.bf16.msra.mxu0 %v1593_v41  ;;  %1620 = vmatprep.subr.bf16.mxu1 %v1619_v52 }
  0x83   :  { %1596 = vmatprep.subr.bf16.mxu0 %v1595_v44  ;;  %v2290_v44 = vld [vmem:[#allocation5 + $0x28] sm:$0xff] }
  0x85   :  { %1622 = vmatpush3.bf16.msra.mxu1 %v1619_v52 }
  0x86   :  { %1598 = vmatpush1.bf16.msra.mxu0 %v1597_v50  ;;  %1624 = vmatprep.subr.bf16.mxu1 %v1623_v61 }
  0x87   :  { %1600 = vmatprep.subr.bf16.mxu0 %v1599_v53 }
  0x89   :  { %1626 = vmatpush3.bf16.msra.mxu1 %v1623_v61 }
  0x8a   :  { %1602 = vmatpush1.bf16.msra.mxu0 %v1601_v59  ;;  %1628 = vmatprep.subr.bf16.mxu1 %v1627_v4 }
  0x8b   :  { %1604 = vmatprep.subr.bf16.mxu0 %v1603_v62  ;;  %v2332_v62 = vld [vmem:[#allocation5 + $0x30] sm:$0xff] }
  0x8d   :  { %1630 = vmatpush3.bf16.msra.mxu1 %v1627_v4 }
  0x8e   :  { %1606 = vmatpush1.bf16.msra.mxu0 %v1605_v3  ;;  %1632 = vmatprep.subr.bf16.mxu1 %v1631_v7 }
  0x8f   :  { %1639 = vmatprep.subr.bf16.mxu0 %v2058_v12 }
  0x91   :  { %262 = vmatmul.mubr.f32.vlgmr.msra.gmra.mrb[0].mxu0 %v2238_v26  ;;  %1634 = vmatpush3.bf16.msra.mxu1 %v1631_v7  ;;  %v2346_v7 = vld [vmem:[#allocation5 + $0x40] sm:$0xff] }
  0x92   :  { %267 = vmatprep.mubr.f32.mxu0 %v2057_v0  ;;  %1636 = vmatprep.subr.bf16.mxu1 %v1635_v11 }
  0x95   :  { %268 = vmatmul.mubr.f32.gmra.mrb[2].mxu0 %v131_v10  ;;  %1638 = vmatpush3.bf16.msra.mxu1 %v1635_v11 }
  0x96   :  { %1663 = vmatprep.subr.bf16.mxu1 %v2058_v12  ;;  %1432 = vmatprep.mubr.msk.f32.mxu0 %vm2059_vm0, %v2057_v0 }
  0x98   :  { %1398 = vmatmul.mubr.f32.vlgmr.msra.gmra.mrb[0].mxu1 %v131_v10 }
  0x99   :  { %1467 = vmatprep.mubr.msk.f32.mxu1 %vm2059_vm0, %v2057_v0 }
 0x164   :  { %v2260_v18 = vpop.f32.mrb[0].mxu0 }
 0x165   :  { %v265_v19 = vpop.f32.mrb[1].mxu0 }
 0x166   :  { %v2262_v22 = vadd.f32 %v265_v19, %v189_v17 }
 0x168   :  { %v2264_v23 = vpop.f32.mrb[2].mxu0  ;;  %v365_v24 = vmul.f32 %v349_v20, %v2262_v22  ;;  %v366_v25 = vmul.f32 %v350_v21, %v2262_v22  ;;  %v367_v35 = vmul.f32 %v2270_v29, %v2262_v22  ;;  %v368_v36 = vmul.f32 %v2272_v30, %v2262_v22 }
 0x169   :  { %v271_v26 = vpop.f32.mrb[3].mxu0  ;;  %v369_v47 = vmul.f32 %v2288_v43, %v2262_v22  ;;  %v370_v52 = vmul.f32 %v2290_v44, %v2262_v22  ;;  %v371_v2 = vmul.f32 %v2332_v62, %v2262_v22  ;;  %v372_v3 = vmul.f32 %v2334_v63, %v2262_v22 }
 0x16a   :  { %v2268_v27 = vadd.f32 %v271_v26, %v189_v17  ;;  %v1640_v28 = vpack.c.bf16 %v366_v25, %v365_v24  ;;  %v1643_v40 = vpack.c.bf16 %v368_v36, %v367_v35  ;;  %v373_v10 = vmul.f32 %v2346_v7, %v2262_v22 }
 0x16b   :  { %v1399_v38 = vpop.f32.mrb[0].mxu1  ;;  %v1646_v59 = vpack.c.bf16 %v370_v52, %v369_v47  ;;  %v1649_v4 = vpack.c.bf16 %v372_v3, %v371_v2  ;;  %v374_v11 = vmul.f32 %v2348_v8, %v2262_v22 }
 0x16c   :  { %1641 = vmatpush3.bf16.xpose.msra.mxu0 %v1640_v28  ;;  %v381_v32 = vmul.f32 %v349_v20, %v2268_v27  ;;  %v382_v33 = vmul.f32 %v350_v21, %v2268_v27  ;;  %v340_v39 = vpop.f32.mrb[1].mxu1  ;;  %v383_v41 = vmul.f32 %v2270_v29, %v2268_v27  ;;  %v384_v42 = vmul.f32 %v2272_v30, %v2268_v27 }
 0x16d   :  { %1642 = vmatprep.subr.bf16.mxu0 %v2058_v12  ;;  %v2292_v45 = vadd.f32 %v1399_v38, %v193_v37  ;;  %v2294_v46 = vadd.f32 %v340_v39, %v193_v37  ;;  %v385_v60 = vmul.f32 %v2288_v43, %v2268_v27  ;;  %v386_v61 = vmul.f32 %v2290_v44, %v2268_v27 }
 0x16e   :  { %v1664_v34 = vpack.c.bf16 %v382_v33, %v381_v32  ;;  %v1667_v51 = vpack.c.bf16 %v384_v42, %v383_v41  ;;  %v387_v5 = vmul.f32 %v2332_v62, %v2268_v27  ;;  %v388_v6 = vmul.f32 %v2334_v63, %v2268_v27  ;;  %v2374_v33 = vld [vmem:[#allocation5 + $0x60] sm:$0xff]  ;;  %v2388_v41 = vld [vmem:[#allocation5 + $0x70] sm:$0xff]  ;;  %v2390_v42 = vld [vmem:[#allocation5 + $0x78] sm:$0xff] }
 0x16f   :  { %v2300_v48 = vmul.f32 %v349_v20, %v2292_v45  ;;  %v2303_v49 = vmul.f32 %v350_v21, %v2292_v45  ;;  %v2307_v50 = vmul.f32 %v2270_v29, %v2292_v45  ;;  %v2312_v53 = vmul.f32 %v349_v20, %v2294_v46  ;;  %v2360_v20 = vld [vmem:[#allocation5 + $0x50] sm:$0xff] }
 0x170   :  { %1665 = vmatpush3.bf16.xpose.msra.mxu1 %v1664_v34  ;;  %v2315_v54 = vmul.f32 %v350_v21, %v2294_v46  ;;  %v2321_v56 = vmul.f32 %v2272_v30, %v2292_v45  ;;  %v1670_v1 = vpack.c.bf16 %v386_v61, %v385_v60  ;;  %v1673_v9 = vpack.c.bf16 %v388_v6, %v387_v5  ;;  %v2362_v21 = vld [vmem:[#allocation5 + $0x58] sm:$0xff]  ;;  %v2376_v34 = vld [vmem:[#allocation5 + $0x68] sm:$0xff] }
 0x171   :  { %1666 = vmatprep.subr.bf16.mxu1 %v2058_v12  ;;  %v1712_v55 = vpack.c.bf16 %v2303_v49, %v2300_v48  ;;  %v1652_v13 = vpack.c.bf16 %v374_v11, %v373_v10  ;;  %v389_v17 = vmul.f32 %v2346_v7, %v2268_v27  ;;  %v390_v19 = vmul.f32 %v2348_v8, %v2268_v27 }
 0x172   :  { %v1688_v57 = vpack.c.bf16 %v2315_v54, %v2312_v53  ;;  %v1715_v58 = vpack.c.bf16 %v2321_v56, %v2307_v50  ;;  %v375_v25 = vmul.f32 %v2360_v20, %v2262_v22  ;;  %v376_v26 = vmul.f32 %v2362_v21, %v2262_v22 }
 0x173   :  { %v1676_v24 = vpack.c.bf16 %v390_v19, %v389_v17  ;;  %v391_v31 = vmul.f32 %v2360_v20, %v2268_v27  ;;  %v392_v32 = vmul.f32 %v2362_v21, %v2268_v27  ;;  %v377_v36 = vmul.f32 %v2374_v33, %v2262_v22 }
 0x174   :  { %1644 = vmatpush3.bf16.xpose.msra.mxu0 %v1643_v40  ;;  %v1655_v28 = vpack.c.bf16 %v376_v26, %v375_v25  ;;  %v378_v37 = vmul.f32 %v2376_v34, %v2262_v22  ;;  %v393_v39 = vmul.f32 %v2374_v33, %v2268_v27  ;;  %v394_v40 = vmul.f32 %v2376_v34, %v2268_v27 }
 0x175   :  { %1645 = vmatprep.subr.bf16.mxu0 %v2058_v12  ;;  %v1679_v35 = vpack.c.bf16 %v392_v32, %v391_v31  ;;  %v380_v52 = vmul.f32 %v2390_v42, %v2262_v22  ;;  %v395_v61 = vmul.f32 %v2388_v41, %v2268_v27  ;;  %v399_v3 = vmul.f32 %v2270_v29, %v2294_v46 }
 0x176   :  { %v1658_v38 = vpack.c.bf16 %v378_v37, %v377_v36  ;;  %v1682_v47 = vpack.c.bf16 %v394_v40, %v393_v39  ;;  %v402_v6 = vmul.f32 %v2290_v44, %v2294_v46  ;;  %v403_v54 = vmul.f32 %v2332_v62, %v2294_v46 }
 0x177   :  { %v420_v48 = vmul.f32 %v2334_v63, %v2292_v45  ;;  %v422_v50 = vmul.f32 %v2348_v8, %v2292_v45  ;;  %v410_v17 = vmul.f32 %v2376_v34, %v2294_v46  ;;  %v411_v25 = vmul.f32 %v2388_v41, %v2294_v46 }
 0x178   :  { %1668 = vmatpush3.bf16.xpose.msra.mxu1 %v1667_v51  ;;  %v379_v51 = vmul.f32 %v2388_v41, %v2262_v22  ;;  %v412_v26 = vmul.f32 %v2390_v42, %v2294_v46 }
 0x179   :  { %1669 = vmatprep.subr.bf16.mxu1 %v2058_v12 }
 0x17a   :  { %v1661_v60 = vpack.c.bf16 %v380_v52, %v379_v51  ;;  %v1709_v32 = vpack.c.bf16 %v412_v26, %v411_v25 }
 0x17c   :  { %1647 = vmatpush3.bf16.xpose.msra.mxu0 %v1646_v59  ;;  %v184_v59 = vsub.s32 0, %v2249_v14  ;;  %v1220_v14 = vld [vmem:[%s2592_s11] ss:$0 sm:$0xff] }
 0x17d   :  { %1648 = vmatprep.subr.bf16.mxu0 %v2058_v12 }
 0x17e   :  { %v185_v2 = vrot.slane %v2255_v16, %v184_v59 }
 0x180   :  { %1671 = vmatpush3.bf16.xpose.msra.mxu1 %v1670_v1  ;;  %v396_v1 = vmul.f32 %v2390_v42, %v2268_v27  ;;  %v264_v5 = vadd.f32 %v2260_v18, %v185_v2  ;;  %v401_v27 = vmul.f32 %v2288_v43, %v2294_v46  ;;  %v270_v29 = vadd.f32 %v2264_v23, %v185_v2 }
 0x181   :  { %1672 = vmatprep.subr.bf16.mxu1 %v2058_v12  ;;  %v417_v18 = vmul.f32 %v2288_v43, %v2292_v45  ;;  %v404_v23 = vmul.f32 %v2334_v63, %v2294_v46  ;;  %v421_v63 = vmul.f32 %v2346_v7, %v2292_v45 }
 0x182   :  { %v1685_v22 = vpack.c.bf16 %v396_v1, %v395_v61  ;;  %v1694_v53 = vpack.c.bf16 %v402_v6, %v401_v27 }
 0x183   :  { %v1697_v49 = vpack.c.bf16 %v404_v23, %v403_v54  ;;  %v1724_v10 = vpack.c.bf16 %v422_v50, %v421_v63  ;;  %v767_v63 = vld [vmem:[#allocation8] sm:$0xff]  ;;  %v768_v50 = vld [vmem:[#allocation8 + $0x8] sm:$0xff] }
 0x184   :  { %1650 = vmatpush3.bf16.xpose.msra.mxu0 %v1649_v4  ;;  %v400_v4 = vmul.f32 %v2272_v30, %v2294_v46  ;;  %v418_v30 = vmul.f32 %v2290_v44, %v2292_v45  ;;  %v419_v44 = vmul.f32 %v2332_v62, %v2292_v45 }
 0x185   :  { %1651 = vmatprep.subr.bf16.mxu0 %v2058_v12 }
 0x186   :  { %v1691_v16 = vpack.c.bf16 %v400_v4, %v399_v3  ;;  %v1718_v43 = vpack.c.bf16 %v418_v30, %v417_v18  ;;  %v1721_v62 = vpack.c.bf16 %v420_v48, %v419_v44 }
 0x188   :  { %1674 = vmatpush3.bf16.xpose.msra.mxu1 %v1673_v9  ;;  %v408_v9 = vmul.f32 %v2362_v21, %v2294_v46 }
 0x189   :  { %1675 = vmatprep.subr.bf16.mxu1 %v2058_v12 }
 0x18c   :  { %1653 = vmatpush3.bf16.xpose.msra.mxu0 %v1652_v13  ;;  %v409_v13 = vmul.f32 %v2374_v33, %v2294_v46 }
 0x18d   :  { %1654 = vmatprep.subr.bf16.mxu0 %v2058_v12 }
 0x190   :  { %1677 = vmatpush3.bf16.xpose.msra.mxu1 %v1676_v24  ;;  %v1706_v24 = vpack.c.bf16 %v410_v17, %v409_v13 }
 0x191   :  { %1678 = vmatprep.subr.bf16.mxu1 %v2058_v12 }
 0x194   :  { %1656 = vmatpush3.bf16.xpose.msra.mxu0 %v1655_v28  ;;  %v427_v28 = vmul.f32 %v2388_v41, %v2292_v45 }
 0x195   :  { %1657 = vmatprep.subr.bf16.mxu0 %v2058_v12 }
 0x198   :  { %1680 = vmatpush3.bf16.xpose.msra.mxu1 %v1679_v35 }
 0x199   :  { %1681 = vmatprep.subr.bf16.mxu1 %v2058_v12 }
 0x19c   :  { %1659 = vmatpush3.bf16.xpose.msra.mxu0 %v1658_v38 }
 0x19d   :  { %1660 = vmatprep.subr.bf16.mxu0 %v2058_v12 }
 0x1a0   :  { %1683 = vmatpush3.bf16.xpose.msra.mxu1 %v1682_v47 }
 0x1a1   :  { %1684 = vmatprep.subr.bf16.mxu1 %v2058_v12 }
 0x1a4   :  { %1662 = vmatpush3.bf16.xpose.msra.mxu0 %v1661_v60 }
 0x1a5   :  { %1687 = vmatprep.subr.bf16.mxu0 %v2058_v12 }
 0x1a8   :  { %1686 = vmatpush3.bf16.xpose.msra.mxu1 %v1685_v22 }
 0x1a9   :  { %1711 = vmatprep.subr.bf16.mxu1 %v2058_v12 }
 0x1ab   :  { %1433 = vmatmul.mubr.f32.vlgmr.msra.gmra.mrb[4].mxu0 %v264_v5 }
 0x1ac   :  { %1689 = vmatpush3.bf16.msra.mxu0 %v1688_v57  ;;  %1502 = vmatprep.mubr.msk.f32.mxu0 %vm2059_vm0, %v2057_v0  ;;  %v406_v57 = vmul.f32 %v2348_v8, %v2294_v46  ;;  %v424_v8 = vmul.f32 %v2362_v21, %v2292_v45  ;;  %v426_v21 = vmul.f32 %v2376_v34, %v2292_v45 }
 0x1ad   :  { %1690 = vmatprep.subr.bf16.mxu0 %v2058_v12 }
 0x1af   :  { %1468 = vmatmul.mubr.f32.vlgmr.msra.gmra.mrb[2].mxu1 %v270_v29 }
 0x1b0   :  { %1713 = vmatpush3.bf16.msra.mxu1 %v1712_v55  ;;  %1692 = vmatpush3.bf16.msra.mxu0 %v1691_v16  ;;  %v405_v55 = vmul.f32 %v2346_v7, %v2294_v46  ;;  %v423_v7 = vmul.f32 %v2360_v20, %v2292_v45 }
 0x1b1   :  { %1714 = vmatprep.subr.bf16.mxu1 %v2058_v12  ;;  %1693 = vmatprep.subr.bf16.mxu0 %v2058_v12 }
 0x1b2   :  { %1537 = vmatprep.mubr.msk.f32.mxu1 %vm2059_vm0, %v2057_v0  ;;  %v1700_v56 = vpack.c.bf16 %v406_v57, %v405_v55  ;;  %v1727_v19 = vpack.c.bf16 %v424_v8, %v423_v7  ;;  %v769_v8 = vld [vmem:[#allocation8 + $0x10] sm:$0xff] }
 0x1b4   :  { %1716 = vmatpush3.bf16.msra.mxu1 %v1715_v58  ;;  %1695 = vmatpush3.bf16.msra.mxu0 %v1694_v53  ;;  %v407_v58 = vmul.f32 %v2360_v20, %v2294_v46  ;;  %v425_v20 = vmul.f32 %v2374_v33, %v2292_v45  ;;  %v428_v33 = vmul.f32 %v2390_v42, %v2292_v45 }
 0x1b5   :  { %1717 = vmatprep.subr.bf16.mxu1 %v2058_v12  ;;  %1696 = vmatprep.subr.bf16.mxu0 %v2058_v12 }
 0x1b6   :  { %v1703_v11 = vpack.c.bf16 %v408_v9, %v407_v58  ;;  %v1730_v31 = vpack.c.bf16 %v426_v21, %v425_v20  ;;  %v1733_v46 = vpack.c.bf16 %v428_v33, %v427_v28  ;;  %v771_v20 = vld [vmem:[#allocation8 + $0x20] sm:$0xff]  ;;  %v772_v21 = vld [vmem:[#allocation8 + $0x28] sm:$0xff]  ;;  %v773_v28 = vld [vmem:[#allocation8 + $0x30] sm:$0xff] }
 0x1b7   :  { %v1743_v26 = vpack.c.bf16 %v772_v21, %v771_v20  ;;  %v775_v33 = vld [vmem:[#allocation8 + $0x40] sm:$0xff]  ;;  %v931_v20 = vld [vmem:[#allocation10 + $0xa8] sm:$0xff]  ;;  %v933_v21 = vld [vmem:[#allocation10 + $0xb8] sm:$0xff] }
 0x1b8   :  { %1719 = vmatpush3.bf16.msra.mxu1 %v1718_v43  ;;  %1698 = vmatpush3.bf16.msra.mxu0 %v1697_v49 }
 0x1b9   :  { %1720 = vmatprep.subr.bf16.mxu1 %v2058_v12  ;;  %1699 = vmatprep.subr.bf16.mxu0 %v2058_v12 }
 0x1bc   :  { %1722 = vmatpush3.bf16.msra.mxu1 %v1721_v62  ;;  %1701 = vmatpush3.bf16.msra.mxu0 %v1700_v56  ;;  %v1735_v56 = vpack.c.bf16 %v768_v50, %v767_v63  ;;  %v923_v63 = vld [vmem:[#allocation10 + $0x68] sm:$0xff] }
 0x1bd   :  { %1723 = vmatprep.subr.bf16.mxu1 %v2058_v12  ;;  %1702 = vmatprep.subr.bf16.mxu0 %v2058_v12 }
 0x1c0   :  { %1725 = vmatpush3.bf16.msra.mxu1 %v1724_v10  ;;  %1704 = vmatpush3.bf16.msra.mxu0 %v1703_v11  ;;  %v770_v11 = vld [vmem:[#allocation8 + $0x18] sm:$0xff] }
 0x1c1   :  { %1726 = vmatprep.subr.bf16.mxu1 %v2058_v12  ;;  %1705 = vmatprep.subr.bf16.mxu0 %v2058_v12 }
 0x1c4   :  { %1728 = vmatpush3.bf16.msra.mxu1 %v1727_v19  ;;  %1707 = vmatpush3.bf16.msra.mxu0 %v1706_v24  ;;  %v1739_v19 = vpack.c.bf16 %v770_v11, %v769_v8  ;;  %v927_v8 = vld [vmem:[#allocation10 + $0x88] sm:$0xff]  ;;  %v929_v11 = vld [vmem:[#allocation10 + $0x98] sm:$0xff] }
 0x1c5   :  { %1729 = vmatprep.subr.bf16.mxu1 %v2058_v12  ;;  %1708 = vmatprep.subr.bf16.mxu0 %v2058_v12 }
 0x1c8   :  { %1731 = vmatpush3.bf16.msra.mxu1 %v1730_v31  ;;  %1710 = vmatpush3.bf16.msra.mxu0 %v1709_v32  ;;  %v774_v31 = vld [vmem:[#allocation8 + $0x38] sm:$0xff] }
 0x1c9   :  { %1732 = vmatprep.subr.bf16.mxu1 %v2058_v12  ;;  %1736 = vmatprep.subr.bf16.mxu0 %v1735_v56  ;;  %v1747_v32 = vpack.c.bf16 %v774_v31, %v773_v28  ;;  %v932_v28 = vld [vmem:[#allocation10 + $0xb0] sm:$0xff]  ;;  %v935_v31 = vld [vmem:[#allocation10 + $0xc8] sm:$0xff] }
 0x1cc   :  { %1734 = vmatpush3.bf16.msra.mxu1 %v1733_v46  ;;  %v776_v46 = vld [vmem:[#allocation8 + $0x48] sm:$0xff] }
 0x27e   :  { %v495_v34 = vpop.f32.mrb[4].mxu0 }
 0x27f   :  { %569 = vrot.lane.b32.xlu0 %v495_v34, %s2060_s3  ;;  %v1434_v35 = vpop.f32.mrb[5].mxu0 }
 0x280   :  { %v777_v35 = vld [vmem:[#allocation8 + $0x50] sm:$0xff] }
 0x282   :  { %v565_v36 = vpop.f32.mrb[2].mxu1 }
 0x283   :  { %v1469_v37 = vpop.f32.mrb[3].mxu1  ;;  %571 = vrot.lane.b32.xlu0 %v565_v36, %s2060_s3 }
 0x2f1   :  { %v570_v45 = vpop.permute.xlu0 %569 }
 0x2f2   :  { %v573_v38 = vmax.f32 %v495_v34, %v570_v45  ;;  %v779_v45 = vld [vmem:[#allocation8 + $0x60] sm:$0xff] }
 0x2f4   :  { %575 = vrot.lane.b32.xlu1 %v573_v38, %s2061_s29 }
 0x2f5   :  { %v572_v39 = vpop.permute.xlu0 %571 }
 0x2f6   :  { %v574_v40 = vmax.f32 %v565_v36, %v572_v39 }
 0x2f8   :  { %577 = vrot.lane.b32.xlu1 %v574_v40, %s2061_s29 }
 0x366   :  { %v576_v12 = vpop.permute.xlu1 %575 }
 0x367   :  { %v579_v41 = vmax.f32 %v573_v38, %v576_v12  ;;  %v780_v38 = vld [vmem:[#allocation8 + $0x68] sm:$0xff]  ;;  %v782_v12 = vld [vmem:[#allocation8 + $0x78] sm:$0xff] }
 0x368   :  { %v1759_v39 = vpack.c.bf16 %v780_v38, %v779_v45 }
 0x369   :  { %581 = vrot.lane.b32.xlu0 %v579_v41, %s2055_s28 }
 0x36a   :  { %v578_v42 = vpop.permute.xlu1 %577 }
 0x36b   :  { %v580_v47 = vmax.f32 %v574_v40, %v578_v42  ;;  %v781_v40 = vld [vmem:[#allocation8 + $0x70] sm:$0xff] }
 0x36d   :  { %583 = vrot.lane.b32.xlu1 %v580_v47, %s2055_s28 }
 0x3db   :  { %v582_v51 = vpop.permute.xlu0 %581 }
 0x3dc   :  { %v585_v52 = vmax.f32 %v579_v41, %v582_v51  ;;  %v1763_v41 = vpack.c.bf16 %v782_v12, %v781_v40  ;;  %v940_v40 = vld [vmem:[#allocation10 + $0xf0] sm:$0xff] }
 0x3de   :  { %587 = vrot.lane.b32.xlu0 %v585_v52, %s2048_s26 }
 0x3df   :  { %v584_v60 = vpop.permute.xlu1 %583 }
 0x3e0   :  { %v586_v61 = vmax.f32 %v580_v47, %v584_v60  ;;  %v911_v60 = vld [vmem:[#allocation10 + $0x8] sm:$0xff] }
 0x3e2   :  { %589 = vrot.lane.b32.xlu1 %v586_v61, %s2048_s26 }
 0x450   :  { %v588_v1 = vpop.permute.xlu0 %587 }
 0x451   :  { %v591_v2 = vmax.f32 %v585_v52, %v588_v1  ;;  %v910_v1 = vld [vmem:[#allocation10] sm:$0xff] }
 0x453   :  { %v593_v22 = vsub.f32 %v495_v34, %v591_v2  ;;  %v1751_v34 = vpack.c.bf16 %v776_v46, %v775_v33 }
 0x454   :  { %v590_v3 = vpop.permute.xlu1 %589 }
 0x455   :  { %v595_v4 = vmul.f32 1.442695, %v593_v22  ;;  %v592_v5 = vmax.f32 %v586_v61, %v590_v3  ;;  %v913_v61 = vld [vmem:[#allocation10 + $0x18] sm:$0xff]  ;;  %v912_v22 = vld [vmem:[#allocation10 + $0x10] sm:$0xff]  ;;  %v915_v3 = vld [vmem:[#allocation10 + $0x28] sm:$0xff] }
 0x456   :  { %v1767_v2 = vpack.c.bf16 %v913_v61, %v911_v60  ;;  %v1053_v60 = vld [vmem:[#allocation11 + $0x90] sm:$0xff]  ;;  %v1054_v61 = vld [vmem:[#allocation11 + $0x98] sm:$0xff] }
 0x457   :  { %1865 = vpow2.f32 %v595_v4  ;;  %v594_v16 = vsub.f32 %v565_v36, %v592_v5  ;;  %v778_v36 = vld [vmem:[#allocation8 + $0x58] sm:$0xff]  ;;  %v1769_v5 = vpack.c.bf16 %v912_v22, %v910_v1  ;;  %v1037_v22 = vld [vmem:[#allocation11 + $0x10] sm:$0xff] }
 0x458   :  { %v1755_v37 = vpack.c.bf16 %v778_v36, %v777_v35  ;;  %v917_v4 = vld [vmem:[#allocation10 + $0x38] sm:$0xff]  ;;  %1768 = vmatprep.subr.bf16.mxu1 %v1767_v2  ;;  %v936_v35 = vld [vmem:[#allocation10 + $0xd0] sm:$0xff]  ;;  %v939_v36 = vld [vmem:[#allocation10 + $0xe8] sm:$0xff]  ;;  %v2521_v2 = vpack.c.bf16 %v1054_v61, %v1053_v60 }
 0x459   :  { %v597_v27 = vmul.f32 1.442695, %v594_v16  ;;  %v1771_v16 = vpack.c.bf16 %v917_v4, %v915_v3  ;;  %v1038_v3 = vld [vmem:[#allocation11 + $0x18] sm:$0xff]  ;;  %v1055_v4 = vld [vmem:[#allocation11 + $0xa0] sm:$0xff] }
 0x45b   :  { %1867 = vpow2.f32 %v597_v27  ;;  %v914_v27 = vld [vmem:[#allocation10 + $0x20] sm:$0xff] }
 0x461   :  { %v1866_v6 = vpop.eup %1865 }
 0x462   :  { %599 = vrot.lane.b32.xlu0 %v1866_v6, %s2060_s3 }
 0x465   :  { %v1868_v29 = vpop.eup %1867 }
 0x466   :  { %601 = vrot.lane.b32.xlu1 %v1868_v29, %s2060_s3 }
 0x4d4   :  { %v600_v18 = vpop.permute.xlu0 %599 }
 0x4d5   :  { %v603_v30 = vadd.f32 %v1866_v6, %v600_v18  ;;  %v1217_v18 = vld [vmem:[%s2586_s5] ss:$0 sm:$0xff] }
 0x4d7   :  { %605 = vrot.lane.b32.xlu0 %v603_v30, %s2061_s29 }
 0x4d8   :  { %v602_v53 = vpop.permute.xlu1 %601 }
 0x4d9   :  { %v604_v54 = vadd.f32 %v1868_v29, %v602_v53 }
 0x4db   :  { %607 = vrot.lane.b32.xlu1 %v604_v54, %s2061_s29 }
 0x549   :  { %v606_v23 = vpop.permute.xlu0 %605 }
 0x54a   :  { %v609_v43 = vadd.f32 %v606_v23, %v603_v30 }
 0x54c   :  { %611 = vrot.lane.b32.xlu0 %v609_v43, %s2055_s28 }
 0x54d   :  { %v608_v44 = vpop.permute.xlu1 %607 }
 0x54e   :  { %v610_v48 = vadd.f32 %v608_v44, %v604_v54 }
 0x550   :  { %613 = vrot.lane.b32.xlu1 %v610_v48, %s2055_s28 }
 0x5be   :  { %v612_v49 = vpop.permute.xlu0 %611 }
 0x5bf   :  { %v615_v55 = vadd.f32 %v612_v49, %v609_v43  ;;  %v921_v49 = vld [vmem:[#allocation10 + $0x58] sm:$0xff] }
 0x5c1   :  { %617 = vrot.lane.b32.xlu0 %v615_v55, %s2048_s26 }
 0x5c2   :  { %v614_v57 = vpop.permute.xlu1 %613 }
 0x5c3   :  { %v616_v62 = vadd.f32 %v614_v57, %v610_v48  ;;  %v919_v48 = vld [vmem:[#allocation10 + $0x48] sm:$0xff]  ;;  %v918_v57 = vld [vmem:[#allocation10 + $0x40] sm:$0xff] }
 0x5c5   :  { %619 = vrot.lane.b32.xlu1 %v616_v62, %s2048_s26 }
 0x633   :  { %v618_v58 = vpop.permute.xlu0 %617 }
 0x634   :  { %v621_v9 = vadd.f32 %v618_v58, %v615_v55  ;;  %v1775_v55 = vpack.c.bf16 %v921_v49, %v919_v48  ;;  %v922_v58 = vld [vmem:[#allocation10 + $0x60] sm:$0xff]  ;;  %v1042_v48 = vld [vmem:[#allocation11 + $0x38] sm:$0xff] }
 0x635   :  { %v1059_v49 = vld [vmem:[#allocation11 + $0xc0] sm:$0xff] }
 0x636   :  { %1869 = vrcp.f32 %v621_v9  ;;  %v924_v9 = vld [vmem:[#allocation10 + $0x70] sm:$0xff] }
 0x637   :  { %v620_v10 = vpop.permute.xlu1 %619 }
 0x638   :  { %v622_v7 = vadd.f32 %v620_v10, %v616_v62  ;;  %v920_v62 = vld [vmem:[#allocation10 + $0x50] sm:$0xff] }
 0x639   :  { %v1777_v50 = vpack.c.bf16 %v920_v62, %v918_v57 }
 0x63a   :  { %1871 = vrcp.f32 %v622_v7  ;;  %v1781_v7 = vpack.c.bf16 %v924_v9, %v922_v58  ;;  %v1062_v58 = vld [vmem:[#allocation11 + $0xd8] sm:$0xff] }
 0x640   :  { %v1870_v13 = vpop.eup %1869 }
 0x641   :  { %v624_v17 = vmul.f32 %v1870_v13, %v1866_v6  ;;  %v916_v6 = vld [vmem:[#allocation10 + $0x30] sm:$0xff]  ;;  %v926_v13 = vld [vmem:[#allocation10 + $0x80] sm:$0xff] }
 0x643   :  { %1503 = vmatmul.mubr.f32.vlgmr.msra.gmra.mrb[6].mxu0 %v624_v17  ;;  %v1783_v17 = vpack.c.bf16 %v929_v11, %v927_v8  ;;  %v1046_v8 = vld [vmem:[#allocation11 + $0x58] sm:$0xff]  ;;  %v1063_v11 = vld [vmem:[#allocation11 + $0xe0] sm:$0xff] }
 0x644   :  { %v1872_v24 = vpop.eup %1871  ;;  %1738 = vmatpush3.bf16.msra.mxu0 %v1735_v56  ;;  %v925_v56 = vld [vmem:[#allocation10 + $0x78] sm:$0xff] }
 0x645   :  { %v626_v25 = vmul.f32 %v1872_v24, %v1868_v29  ;;  %1740 = vmatprep.subr.bf16.mxu0 %v1739_v19  ;;  %v1773_v29 = vpack.c.bf16 %v916_v6, %v914_v27  ;;  %v1779_v10 = vpack.c.bf16 %v925_v56, %v923_v63  ;;  %v1039_v6 = vld [vmem:[#allocation11 + $0x20] sm:$0xff]  ;;  %v1061_v56 = vld [vmem:[#allocation11 + $0xd0] sm:$0xff] }
 0x646   :  { %v1043_v63 = vld [vmem:[#allocation11 + $0x40] sm:$0xff] }
 0x647   :  { %1538 = vmatmul.mubr.f32.vlgmr.msra.gmra.mrb[4].mxu1 %v626_v25  ;;  %v1787_v25 = vpack.c.bf16 %v933_v21, %v931_v20 }
 0x648   :  { %1742 = vmatpush3.bf16.msra.mxu0 %v1739_v19  ;;  %1018 = vmatprep.mubr.f32.mxu1 %v2057_v0  ;;  %v928_v19 = vld [vmem:[#allocation10 + $0x90] sm:$0xff] }
 0x649   :  { %1744 = vmatprep.subr.bf16.mxu0 %v1743_v26  ;;  %1770 = vmatpush1.bf16.msra.mxu1 %v1769_v5  ;;  %v1785_v24 = vpack.c.bf16 %v928_v19, %v926_v13  ;;  %v1056_v5 = vld [vmem:[#allocation11 + $0xa8] sm:$0xff] }
 0x64a   :  { %1772 = vmatprep.subr.bf16.mxu1 %v1771_v16  ;;  %v2524_v16 = vpack.c.bf16 %v1038_v3, %v1037_v22  ;;  %v2527_v27 = vpack.c.bf16 %v1056_v5, %v1055_v4  ;;  %v1064_v13 = vld [vmem:[#allocation11 + $0xe8] sm:$0xff]  ;;  %v1065_v3 = vld [vmem:[#allocation11 + $0xf0] sm:$0xff] }
 0x64b   :  { %v1823_v19 = vpack.c.bf16 %v1064_v13, %v1063_v11  ;;  %v1049_v4 = vld [vmem:[#allocation11 + $0x70] sm:$0xff] }
 0x64c   :  { %1746 = vmatpush3.bf16.msra.mxu0 %v1743_v26  ;;  %v930_v26 = vld [vmem:[#allocation10 + $0xa0] sm:$0xff] }
 0x64d   :  { %1748 = vmatprep.subr.bf16.mxu0 %v1747_v32  ;;  %1774 = vmatpush1.bf16.msra.mxu1 %v1773_v29  ;;  %v1789_v33 = vpack.c.bf16 %v932_v28, %v930_v26  ;;  %v1040_v29 = vld [vmem:[#allocation11 + $0x28] sm:$0xff] }
 0x64e   :  { %1776 = vmatprep.subr.bf16.mxu1 %v1775_v55  ;;  %v1060_v55 = vld [vmem:[#allocation11 + $0xc8] sm:$0xff] }
 0x64f   :  { %v1815_v62 = vpack.c.bf16 %v1060_v55, %v1059_v49 }
 0x650   :  { %1750 = vmatpush3.bf16.msra.mxu0 %v1747_v32  ;;  %v937_v32 = vld [vmem:[#allocation10 + $0xd8] sm:$0xff] }
 0x651   :  { %1752 = vmatprep.subr.bf16.mxu0 %v1751_v34  ;;  %1778 = vmatpush1.bf16.msra.mxu1 %v1777_v50  ;;  %v1791_v46 = vpack.c.bf16 %v937_v32, %v935_v31  ;;  %v1044_v50 = vld [vmem:[#allocation11 + $0x48] sm:$0xff] }
 0x652   :  { %1780 = vmatprep.subr.bf16.mxu1 %v1779_v10  ;;  %v1817_v9 = vpack.c.bf16 %v1044_v50, %v1043_v63  ;;  %v1819_v10 = vpack.c.bf16 %v1062_v58, %v1061_v56 }
 0x654   :  { %1754 = vmatpush3.bf16.msra.mxu0 %v1751_v34  ;;  %v934_v34 = vld [vmem:[#allocation10 + $0xc0] sm:$0xff] }
 0x655   :  { %1756 = vmatprep.subr.bf16.mxu0 %v1755_v37  ;;  %1782 = vmatpush1.bf16.msra.mxu1 %v1781_v7  ;;  %v1793_v45 = vpack.c.bf16 %v936_v35, %v934_v34  ;;  %v1045_v7 = vld [vmem:[#allocation11 + $0x50] sm:$0xff] }
 0x656   :  { %1784 = vmatprep.subr.bf16.mxu1 %v1783_v17  ;;  %v1821_v17 = vpack.c.bf16 %v1046_v8, %v1045_v7 }
 0x658   :  { %1758 = vmatpush3.bf16.msra.mxu0 %v1755_v37  ;;  %v941_v37 = vld [vmem:[#allocation10 + $0xf8] sm:$0xff] }
 0x659   :  { %1760 = vmatprep.subr.bf16.mxu0 %v1759_v39  ;;  %1786 = vmatpush1.bf16.msra.mxu1 %v1785_v24  ;;  %v1795_v38 = vpack.c.bf16 %v941_v37, %v939_v36 }
 0x65a   :  { %1788 = vmatprep.subr.bf16.mxu1 %v1787_v25 }
 0x65c   :  { %1762 = vmatpush3.bf16.msra.mxu0 %v1759_v39  ;;  %v938_v39 = vld [vmem:[#allocation10 + $0xe0] sm:$0xff] }
 0x65d   :  { %1764 = vmatprep.subr.bf16.mxu0 %v1763_v41  ;;  %1790 = vmatpush1.bf16.msra.mxu1 %v1789_v33  ;;  %v1797_v12 = vpack.c.bf16 %v940_v40, %v938_v39  ;;  %v1218_v39 = vld [vmem:[%s2587_s6] ss:$0 sm:$0xff] }
 0x65e   :  { %1792 = vmatprep.subr.bf16.mxu1 %v1791_v46 }
 0x660   :  { %1766 = vmatpush3.bf16.msra.mxu0 %v1763_v41  ;;  %v1051_v41 = vld [vmem:[#allocation11 + $0x80] sm:$0xff] }
 0x661   :  { %1794 = vmatpush1.bf16.msra.mxu1 %v1793_v45 }
 0x662   :  { %1796 = vmatprep.subr.bf16.mxu1 %v1795_v38 }
 0x665   :  { %1798 = vmatpush1.bf16.msra.mxu1 %v1797_v12  ;;  %v1219_v12 = vld [vmem:[%s2588_s7] ss:$0 sm:$0xff] }
 0x716   :  { %v693_v42 = vpop.f32.mrb[6].mxu0 }
 0x717   :  { %v1504_v47 = vpop.f32.mrb[7].mxu0  ;;  %1572 = vmatprep.mubr.f32.mxu0 %v693_v42  ;;  %v1052_v42 = vld [vmem:[#allocation11 + $0x88] sm:$0xff] }
 0x718   :  { %v1035_v47 = vld [vmem:[#allocation11] sm:$0xff] }
 0x71a   :  { %v763_v51 = vpop.f32.mrb[4].mxu1 }
 0x71b   :  { %v1539_v52 = vpop.f32.mrb[5].mxu1  ;;  %1573 = vmatmul.mubr.f32.vlgmr.msra.gmra.mrb[8].mxu0 %v763_v51  ;;  %v1799_v51 = vpack.c.bf16 %v1052_v42, %v1051_v41 }
 0x71c   :  { %v1036_v52 = vld [vmem:[#allocation11 + $0x8] sm:$0xff] }
 0x71d   :  { %v2519_v1 = vpack.c.bf16 %v1036_v52, %v1035_v47  ;;  %1800 = vmatprep.subr.bf16.mxu0 %v1799_v51  ;;  %1831 = vmatprep.subr.bf16.mxu1 %v1799_v51 }
 0x71f   :  { %1802 = vmatpush3.bf16.msra.mxu0 %v2519_v1 }
 0x720   :  { %1804 = vmatprep.subr.bf16.mxu0 %v2521_v2 }
 0x723   :  { %1806 = vmatpush3.bf16.msra.mxu0 %v2524_v16 }
 0x724   :  { %1808 = vmatprep.subr.bf16.mxu0 %v2527_v27 }
 0x7ee   :  { %v1574_v30 = vpop.f32.mrb[8].mxu0 }
 0x7ef   :  { %v856_v53 = vpop.f32.mrb[9].mxu0  ;;  %v2514_v43 = vadd.f32 %v1574_v30, %v1217_v18  ;;  %v1058_v30 = vld [vmem:[#allocation11 + $0xb8] sm:$0xff] }
 0x7f0   :  { %v2509_v54 = vadd.f32 %v1217_v18, %v856_v53  ;;  %v1057_v18 = vld [vmem:[#allocation11 + $0xb0] sm:$0xff]  ;;  %v2530_v53 = vpack.c.bf16 %v1040_v29, %v1039_v6 }
 0x7f1   :  { %v875_v44 = vmul.f32 %v2514_v43, %v2514_v43 }
 0x7f2   :  { %867 = vadd.xlane.f32.xlu0 %v2509_v54  ;;  %v874_v23 = vmul.f32 %v2509_v54, %v2509_v54  ;;  %1810 = vmatpush3.bf16.msra.mxu0 %v2530_v53 }
 0x7f4   :  { %876 = vadd.xlane.f32.xlu1 %v874_v23  ;;  %v1811_v23 = vpack.c.bf16 %v1058_v30, %v1057_v18 }
 0x7f6   :  { %869 = vadd.xlane.f32.xlu0 %v2514_v43  ;;  %1812 = vmatprep.subr.bf16.mxu0 %v1811_v23 }
 0x7fa   :  { %878 = vadd.xlane.f32.xlu0 %v875_v44  ;;  %v1041_v44 = vld [vmem:[#allocation11 + $0x30] sm:$0xff] }
 0x7fb   :  { %v1813_v57 = vpack.c.bf16 %v1042_v48, %v1041_v44 }
 0x7fd   :  { %1814 = vmatpush3.bf16.msra.mxu0 %v1813_v57 }
 0x7fe   :  { %1816 = vmatprep.subr.bf16.mxu0 %v1815_v62 }
 0x801   :  { %1818 = vmatpush3.bf16.msra.mxu0 %v1817_v9 }
 0x802   :  { %1820 = vmatprep.subr.bf16.mxu0 %v1819_v10 }
 0x805   :  { %1822 = vmatpush3.bf16.msra.mxu0 %v1821_v17 }
 0x806   :  { %1824 = vmatprep.subr.bf16.mxu0 %v1823_v19 }
 0x87f   :  { %v868_v20 = vpop.xlane.xlu0 %867 }
 0x880   :  { %v872_v21 = vmul.f32 0.0078125, %v868_v20 }
 0x881   :  { %v877_v24 = vpop.xlane.xlu1 %876 }
 0x882   :  { %v882_v25 = vmul.f32 %v872_v21, %v872_v21  ;;  %v880_v26 = vmul.f32 0.0078125, %v877_v24  ;;  %v886_v45 = vsub.f32 %v2509_v54, %v872_v21 }
 0x883   :  { %v870_v28 = vpop.xlane.xlu0 %869 }
 0x884   :  { %v884_v31 = vsub.f32 %v880_v26, %v882_v25  ;;  %v873_v32 = vmul.f32 0.0078125, %v870_v28 }
 0x886   :  { %v888_v33 = vadd.f32 1e-05, %v884_v31  ;;  %v883_v34 = vmul.f32 %v873_v32, %v873_v32  ;;  %v887_v42 = vsub.f32 %v2514_v43, %v873_v32 }
 0x887   :  { %v879_v46 = vpop.xlane.xlu0 %878 }
 0x888   :  { %1873 = vrsqrt.f32 %v888_v33  ;;  %v881_v35 = vmul.f32 0.0078125, %v879_v46 }
 0x88a   :  { %v885_v36 = vsub.f32 %v881_v35, %v883_v34 }
 0x88c   :  { %v889_v37 = vadd.f32 1e-05, %v885_v36 }
 0x88e   :  { %1875 = vrsqrt.f32 %v889_v37 }
 0x892   :  { %v1874_v38 = vpop.eup %1873 }
 0x893   :  { %v892_v40 = vmul.f32 %v1874_v38, %v886_v45  ;;  %v1221_v38 = vld [vmem:[%s2593_s12] ss:$0 sm:$0xff] }
 0x895   :  { %v900_v41 = vmul.f32 %v1218_v39, %v892_v40  ;;  %v1222_v40 = vld [vmem:[%s2594_s13] ss:$0 sm:$0xff] }
 0x897   :  { %v908_v47 = vadd.f32 %v1219_v12, %v900_v41 }
 0x898   :  { %v1876_v51 = vpop.eup %1875 }
 0x899   :  { %1019 = vmatmul.mubr.f32.vlgmr.msra.gmra.mrb[6].mxu1 %v908_v47  ;;  %v893_v52 = vmul.f32 %v1876_v51, %v887_v42 }
 0x89a   :  { %1024 = vmatprep.mubr.f32.mxu1 %v2057_v0  ;;  %1839 = vmatpush3.bf16.msra.mxu1 %v2519_v1  ;;  %v1047_v0 = vld [vmem:[#allocation11 + $0x60] sm:$0xff]  ;;  %v1048_v1 = vld [vmem:[#allocation11 + $0x68] sm:$0xff] }
 0x89b   :  { %v901_v60 = vmul.f32 %v1218_v39, %v893_v52  ;;  %1832 = vmatprep.subr.bf16.mxu1 %v2521_v2  ;;  %v1825_v22 = vpack.c.bf16 %v1048_v1, %v1047_v0  ;;  %v1066_v2 = vld [vmem:[#allocation11 + $0xf8] sm:$0xff] }
 0x89c   :  { %v1827_v5 = vpack.c.bf16 %v1066_v2, %v1065_v3 }
 0x89d   :  { %v909_v61 = vadd.f32 %v1219_v12, %v901_v60  ;;  %1826 = vmatpush3.bf16.msra.mxu0 %v1825_v22 }
 0x89e   :  { %1840 = vmatpush3.bf16.msra.mxu1 %v2524_v16  ;;  %v1050_v16 = vld [vmem:[#allocation11 + $0x78] sm:$0xff]  ;;  %1828 = vmatprep.subr.bf16.mxu0 %v1827_v5 }
 0x89f   :  { %1025 = vmatmul.mubr.f32.gmra.mrb[8].mxu1 %v909_v61  ;;  %1833 = vmatprep.subr.bf16.mxu1 %v2527_v27  ;;  %v1829_v6 = vpack.c.bf16 %v1050_v16, %v1049_v4  ;;  %v942_v27 = vld [vmem:[%s2590_s9] sm:$0x3] }
 0x8a0   :  { %v947_v29 = vrot.slane %v942_v27, %v184_v59  ;;  %v951_v18 = vrot.slane %v942_v27, %v188_v15 }
 0x8a1   :  { %1830 = vmatpush3.bf16.msra.mxu0 %v1829_v6 }
 0x8a2   :  { %1841 = vmatpush3.bf16.msra.mxu1 %v2530_v53 }
 0x8a3   :  { %1834 = vmatprep.subr.bf16.mxu1 %v1811_v23 }
 0x8a6   :  { %1842 = vmatpush3.bf16.msra.mxu1 %v1813_v57 }
 0x8a7   :  { %1835 = vmatprep.subr.bf16.mxu1 %v1815_v62 }
 0x8aa   :  { %1843 = vmatpush3.bf16.msra.mxu1 %v1817_v9 }
 0x8ab   :  { %1836 = vmatprep.subr.bf16.mxu1 %v1819_v10 }
 0x8ae   :  { %1844 = vmatpush3.bf16.msra.mxu1 %v1821_v17 }
 0x8af   :  { %1837 = vmatprep.subr.bf16.mxu1 %v1823_v19 }
 0x8b2   :  { %1845 = vmatpush3.bf16.msra.mxu1 %v1825_v22 }
 0x8b3   :  { %1838 = vmatprep.subr.bf16.mxu1 %v1827_v5 }
 0x8b6   :  { %1846 = vmatpush3.bf16.msra.mxu1 %v1829_v6 }
 0x96c   :  { %v1020_v30 = vpop.f32.mrb[6].mxu1 }
 0x96d   :  { %v1021_v53 = vadd.f32 %v1020_v30, %v947_v29  ;;  %v1022_v23 = vpop.f32.mrb[7].mxu1 }
 0x96e   :  { %v1023_v44 = vadd.f32 %v1022_v23, %v951_v18 }
 0x96f   :  { %v1031_v49 = vmax.f32 %v1021_v53, 0.0 }
 0x970   :  { %v1032_v48 = vmax.f32 %v1023_v44, 0.0 }
 0x972   :  { %v1026_v55 = vpop.f32.mrb[8].mxu1  ;;  %1138 = vmatprep.mubr.f32.mxu0 %v1032_v48 }
 0x973   :  { %v1027_v57 = vadd.f32 %v1026_v55, %v947_v29  ;;  %v1028_v62 = vpop.f32.mrb[9].mxu1  ;;  %1139 = vmatmul.mubr.f32.vlgmr.msra.gmra.mrb[10].mxu0 %v1031_v49 }
 0x974   :  { %v1029_v63 = vadd.f32 %v1028_v62, %v951_v18 }
 0x975   :  { %v1033_v56 = vmax.f32 %v1027_v57, 0.0 }
 0x976   :  { %v1034_v50 = vmax.f32 %v1029_v63, 0.0 }
 0x978   :  { %1143 = vmatprep.mubr.f32.mxu1 %v1034_v50 }
 0x979   :  { %1144 = vmatmul.mubr.f32.vlgmr.msra.gmra.mrb[10].mxu1 %v1033_v56 }
 0xa46   :  { %v1359_v59 = vpop.f32.mrb[10].mxu0 }
 0xa47   :  { %v1360_v15 = vpop.f32.mrb[11].mxu0 }
 0xa48   :  { %v1361_v58 = vadd.f32 %v1360_v15, %v1359_v59 }
 0xa4a   :  { %v1141_v9 = vadd.f32 %v1361_v58, %v1220_v14 }
 0xa4c   :  { %v1362_v10 = vpop.f32.mrb[10].mxu1  ;;  %v1149_v7 = vadd.f32 %v1141_v9, %v2509_v54 }
 0xa4d   :  { %v1363_v8 = vpop.f32.mrb[11].mxu1 }
 0xa4e   :  { %v1364_v11 = vadd.f32 %v1363_v8, %v1362_v10  ;;  %1153 = vadd.xlane.f32.xlu1 %v1149_v7  ;;  %v1159_v17 = vmul.f32 %v1149_v7, %v1149_v7 }
 0xa50   :  { %v1146_v13 = vadd.f32 %v1364_v11, %v1220_v14 }
 0xa52   :  { %1161 = vadd.xlane.f32.xlu1 %v1159_v17  ;;  %v1150_v19 = vadd.f32 %v1146_v13, %v2514_v43 }
 0xa54   :  { %1155 = vadd.xlane.f32.xlu0 %v1150_v19  ;;  %v1160_v20 = vmul.f32 %v1150_v19, %v1150_v19 }
 0xa58   :  { %1163 = vadd.xlane.f32.xlu0 %v1160_v20 }
 0xadb   :  { %v1154_v21 = vpop.xlane.xlu1 %1153 }
 0xadc   :  { %v1157_v24 = vmul.f32 0.0078125, %v1154_v21 }
 0xade   :  { %v1167_v26 = vmul.f32 %v1157_v24, %v1157_v24  ;;  %v1171_v43 = vsub.f32 %v1149_v7, %v1157_v24 }
 0xadf   :  { %v1162_v25 = vpop.xlane.xlu1 %1161 }
 0xae0   :  { %v1165_v28 = vmul.f32 0.0078125, %v1162_v25 }
 0xae1   :  { %v1156_v31 = vpop.xlane.xlu0 %1155 }
 0xae2   :  { %v1169_v32 = vsub.f32 %v1165_v28, %v1167_v26  ;;  %v1158_v33 = vmul.f32 0.0078125, %v1156_v31 }
 0xae4   :  { %v1173_v54 = vadd.f32 1e-05, %v1169_v32  ;;  %v1168_v34 = vmul.f32 %v1158_v33, %v1158_v33  ;;  %v1172_v41 = vsub.f32 %v1150_v19, %v1158_v33 }
 0xae5   :  { %v1164_v46 = vpop.xlane.xlu0 %1163 }
 0xae6   :  { %1877 = vrsqrt.f32 %v1173_v54  ;;  %v1166_v35 = vmul.f32 0.0078125, %v1164_v46 }
 0xae8   :  { %v1170_v36 = vsub.f32 %v1166_v35, %v1168_v34 }
 0xaea   :  { %v1174_v37 = vadd.f32 1e-05, %v1170_v36 }
 0xaec   :  { %1879 = vrsqrt.f32 %v1174_v37 }
 0xaf0   :  { %v1878_v45 = vpop.eup %1877 }
 0xaf1   :  { %v1177_v39 = vmul.f32 %v1878_v45, %v1171_v43 }
 0xaf3   :  { %v1185_v12 = vmul.f32 %v1221_v38, %v1177_v39 }
 0xaf5   :  { %v1193_v42 = vadd.f32 %v1222_v40, %v1185_v12 }
 0xaf6   :  { %v1880_v47 = vpop.eup %1879 }
 0xaf7   :  { %v1178_v51 = vmul.f32 %v1880_v47, %v1172_v41  ;;  %1195 = vst [vmem:[#allocation13] sm:$0xff] %v1193_v42 }
 0xaf9   :  { %v1186_v52 = vmul.f32 %v1221_v38, %v1178_v51 }
 0xafb   :  { %v1194_v60 = vadd.f32 %v1222_v40, %v1186_v52 }
 0xafd   :  { %1196 = vst [vmem:[#allocation13 + $0x8] sm:$0xff] %v1194_v60 }
 0xafe   :  { %2024 = shalt.err (!%p2021_p10)
}
 0xaff   :  { %s2025_s1 = scalar_lea.hbm %s2595_s14, 256 }
 0xb00   :  { %p2026_p11 = scmp.ne.s32.totalorder %s2595_s14, %s2025_s1  ;;  %p2029_p12 = scmp.lt.u32.totalorder %s2025_s1, %s2595_s14 }
 0xb02   :  { %p2031_p13 = pnand %p2029_p12, %p2026_p11 }
 0xb04   :  { %2034 = shalt.err (!%p2031_p13)
}
 0xb05   :  { %1208 = dma.vmem_to_hbm [thread:$0]  %s1203_s16, 256, %s2595_s14, [#allocation4], %s2047_s25, %s2047_s25, %s2048_s26  }
 0xb06   :  { %2043 = dma.done.wait [#allocation4], 256  }
 0xb07   :  { %2044 = vsyncadd [#allocation4], 4294967040 }
 0xb08   :  { %1212 = vsyncpa [#allocation3], 1 }
 0xb09   :  { %1213 = vsyncpa [#allocation6], 1 }
 0xb0a   :  { %1214 = vsyncpa [#allocation9], 1 }
 0xb0b   :  { %1215 = vsyncpa [#allocation12], 1 }
 0xb0c   :  { %1216 = vsyncpa [#allocation4], 1 }

</bundles_post_ra>
